<compile_context>
chip_gen: v6e
topology: v6e:2x2x1
jax: 0.10.0
libtpu: 0.0.40
codegen_flags: <defaults>
</compile_context>

<pallas_src>
import functools

import jax
import jax.numpy as jnp
from jax.experimental import pallas as pl
from jax.experimental.pallas import tpu as pltpu


# ----------------------------------------------------------------------------
# hardware-aware knobs
# ----------------------------------------------------------------------------
@functools.lru_cache(maxsize=None)
def _vmem_cap_bytes():
    """Physical VMEM per core; defensive fallback = 64 MiB (the v7x budget)."""
    try:
        info_fn = getattr(pltpu, "get_tpu_info", None)
        if info_fn is not None:
            cap = getattr(info_fn(), "vmem_capacity_bytes", None)
            if cap:
                return int(cap)
    except Exception:
        pass
    return 64 * 1024 * 1024


def _vmem_limit_bytes():
    # ~75% of physical, capped: ~96 MiB on v5e/v6e (128 MiB), ~48 MiB on v7x (64 MiB).
    return min(_vmem_cap_bytes() * 3 // 4, 100 * 1024 * 1024)


def _matmul_tile_targets():
    # Bigger output-stationary tiles on 128 MiB chips, smaller on v7x (64 MiB).
    if _vmem_cap_bytes() >= 100 * 1024 * 1024:
        return 1024, 1024          # (tm, tn) targets for v5e / v6e
    return 512, 512                # v7x


def _cparams(*semantics):
    return pltpu.CompilerParams(
        dimension_semantics=semantics if semantics else None,
        vmem_limit_bytes=_vmem_limit_bytes(),
    )


def _tile(dim, target, mult=1):
    """Largest divisor of `dim` that is <= target and a multiple of `mult`.
    Falls back to the full dim (always a legal Pallas block) if none exists."""
    for cand in range(min(dim, target), 0, -1):
        if dim % cand == 0 and cand % mult == 0:
            return cand
    return dim


def _gelu_tanh(x):
    # tanh-approx gelu (matches the original TF-BERT / BLEURT gelu); single EUP tanh.
    # TODO(synk): HF PyTorch BERT defaults to exact erf gelu; expect tiny divergence.
    return 0.5 * x * (1.0 + jnp.tanh(0.7978845608028654 * (x + 0.044715 * x * x * x)))


# ----------------------------------------------------------------------------
# Full-K matmul (+ bias + optional activation).
# Grid = (out-col tiles, row tiles); row axis innermost so the (K, tn) weight
# slab is DMA'd once per column tile and stays VMEM-resident across row tiles.
# ----------------------------------------------------------------------------
def _matmul_bias_act_kernel(x_ref, w_ref, b_ref, o_ref, *, act):
    y = jnp.dot(x_ref[...], w_ref[...], preferred_element_type=jnp.float32)
    y = y + b_ref[...]
    if act == "gelu":
        y = _gelu_tanh(y)
    elif act == "tanh":
        y = jnp.tanh(y)
    o_ref[...] = y.astype(o_ref.dtype)


def matmul_bias_act(x, w, b, act="none", out_dtype=jnp.bfloat16):
    """y = act(x @ w + b); x:(N,K) bf16, w:(K,O) bf16, b:(O,) f32 -> (N,O)."""
    n, kdim = x.shape
    odim = w.shape[1]
    tm_t, tn_t = _matmul_tile_targets()
    tm = _tile(n, tm_t, 8)
    tn = _tile(odim, tn_t, 128)
    grid = (odim // tn, n // tm)             # j outer, i inner (fastest)
    return pl.pallas_call(
        functools.partial(_matmul_bias_act_kernel, act=act),
        out_shape=jax.ShapeDtypeStruct((n, odim), out_dtype),
        grid=grid,
        in_specs=[
            pl.BlockSpec((tm, kdim), lambda j, i: (i, 0)),
            pl.BlockSpec((kdim, tn), lambda j, i: (0, j)),   # resident across i sweep
            pl.BlockSpec((1, tn), lambda j, i: (0, j)),
        ],
        out_specs=pl.BlockSpec((tm, tn), lambda j, i: (i, j)),
        compiler_params=_cparams("parallel", "parallel"),
    )(x, w, b.reshape(1, odim))


# ----------------------------------------------------------------------------
# Full-K matmul with fused residual-add + LayerNorm epilogue (full-H output rows).
# ----------------------------------------------------------------------------
def _matmul_add_ln_kernel(x_ref, w_ref, b_ref, r_ref, g_ref, be_ref, o_ref, *, eps):
    y = jnp.dot(x_ref[...], w_ref[...], preferred_element_type=jnp.float32)
    y = y + b_ref[...] + r_ref[...].astype(jnp.float32)
    mu = jnp.mean(y, axis=-1, keepdims=True)
    d = y - mu
    var = jnp.mean(d * d, axis=-1, keepdims=True)
    inv = jax.lax.rsqrt(var + eps)
    o_ref[...] = (d * inv * g_ref[...] + be_ref[...]).astype(o_ref.dtype)


def matmul_add_ln(x, w, b, res, gamma, beta, eps=1e-12, out_dtype=jnp.bfloat16):
    """LayerNorm(x @ w + b + res); x:(N,K), w:(K,H), res:(N,H) -> (N,H)."""
    n, kdim = x.shape
    h = w.shape[1]
    tm_t, _ = _matmul_tile_targets()
    tm = _tile(n, tm_t, 8)
    grid = (n // tm,)
    return pl.pallas_call(
        functools.partial(_matmul_add_ln_kernel, eps=eps),
        out_shape=jax.ShapeDtypeStruct((n, h), out_dtype),
        grid=grid,
        in_specs=[
            pl.BlockSpec((tm, kdim), lambda i: (i, 0)),
            pl.BlockSpec((kdim, h), lambda i: (0, 0)),       # DMA'd once, resident
            pl.BlockSpec((1, h), lambda i: (0, 0)),
            pl.BlockSpec((tm, h), lambda i: (i, 0)),
            pl.BlockSpec((1, h), lambda i: (0, 0)),
            pl.BlockSpec((1, h), lambda i: (0, 0)),
        ],
        out_specs=pl.BlockSpec((tm, h), lambda i: (i, 0)),
        compiler_params=_cparams("parallel"),
    )(x, w, b.reshape(1, h), res, gamma.reshape(1, h), beta.reshape(1, h))


# ----------------------------------------------------------------------------
# Fused embedding sum + LayerNorm (no (N,H) f32 intermediate in HBM)
# ----------------------------------------------------------------------------
def _emb_ln_kernel(we_ref, te_ref, pe_ref, g_ref, b_ref, o_ref, *, eps):
    x = we_ref[...] + te_ref[...] + pe_ref[...]
    mu = jnp.mean(x, axis=-1, keepdims=True)
    d = x - mu
    var = jnp.mean(d * d, axis=-1, keepdims=True)
    inv = jax.lax.rsqrt(var + eps)
    o_ref[...] = (d * inv * g_ref[...] + b_ref[...]).astype(o_ref.dtype)


def embed_layernorm(we, te, pe, gamma, beta, eps=1e-12, out_dtype=jnp.bfloat16):
    """LayerNorm(word_emb + type_emb + pos_emb); we,te:(B,S,H) f32, pe:(1,S,H) f32."""
    B, S, H = we.shape
    ts = _tile(S, 256, 8)
    grid = (B, S // ts)
    tok_spec = pl.BlockSpec((pl.Squeezed(), ts, H), lambda b, si: (b, si, 0))
    pos_spec = pl.BlockSpec((pl.Squeezed(), ts, H), lambda b, si: (0, si, 0))
    vec_spec = pl.BlockSpec((1, H), lambda b, si: (0, 0))
    return pl.pallas_call(
        functools.partial(_emb_ln_kernel, eps=eps),
        out_shape=jax.ShapeDtypeStruct((B, S, H), out_dtype),
        grid=grid,
        in_specs=[tok_spec, tok_spec, pos_spec, vec_spec, vec_spec],
        out_specs=tok_spec,
        compiler_params=_cparams("parallel", "parallel"),
    )(we, te, pe, gamma.reshape(1, H), beta.reshape(1, H))


# ----------------------------------------------------------------------------
# Attention directly on the flat (N, 3H) fused-QKV output; the context is written
# in (N, H) layout (no XLA relayouts around the kernel).  Heads are processed in
# groups of `hg` per grid step so blocks are 128-lane-dense at BERT scale.
# ----------------------------------------------------------------------------
def _heads_per_step(nh, hd):
    for hg in range(1, nh + 1):
        if nh % hg == 0 and (hg * hd) % 128 == 0:
            return hg             # smallest group giving 128-lane blocks
    return nh                     # tiny models: take all heads, full qkv width


def _attn_kernel_1kv(q_ref, k_ref, v_ref, bias_ref, o_ref,
                     *, hg, hd, q_off, k_off, v_off):
    # Single kv tile: plain one-pass softmax (no online bookkeeping / scratch).
    bias = bias_ref[...]                                         # (1, tkv) f32
    for h in range(hg):                                          # hg is tiny (1-2)
        q = q_ref[:, q_off + h * hd:q_off + (h + 1) * hd]        # (tq, hd) bf16
        k = k_ref[:, k_off + h * hd:k_off + (h + 1) * hd]        # (tkv, hd) bf16
        v = v_ref[:, v_off + h * hd:v_off + (h + 1) * hd]        # (tkv, hd) bf16
        s = jax.lax.dot_general(q, k, (((1,), (1,)), ((), ())),
                                preferred_element_type=jnp.float32) + bias
        m = jnp.max(s, axis=-1, keepdims=True)
        p = jnp.exp(s - m)
        ctx = jnp.dot(p.astype(v.dtype), v, preferred_element_type=jnp.float32)
        inv = pl.reciprocal(jnp.sum(p, axis=-1, keepdims=True), approx=True)
        o_ref[:, h * hd:(h + 1) * hd] = (ctx * inv).astype(o_ref.dtype)


def _attn_kernel_flash(q_ref, k_ref, v_ref, bias_ref, o_ref,
                       m_sc, l_sc, acc_sc, *, hg, hd, q_off, k_off, v_off):
    # Multiple kv tiles: online softmax with per-head f32 scratch.
    kv = pl.program_id(3)

    @pl.when(kv == 0)
    def _():
        m_sc[...] = jnp.full(m_sc.shape, -jnp.inf, m_sc.dtype)
        l_sc[...] = jnp.zeros(l_sc.shape, l_sc.dtype)
        acc_sc[...] = jnp.zeros(acc_sc.shape, acc_sc.dtype)

    bias = bias_ref[...]
    for h in range(hg):
        q = q_ref[:, q_off + h * hd:q_off + (h + 1) * hd]
        k = k_ref[:, k_off + h * hd:k_off + (h + 1) * hd]
        v = v_ref[:, v_off + h * hd:v_off + (h + 1) * hd]
        s = jax.lax.dot_general(q, k, (((1,), (1,)), ((), ())),
                                preferred_element_type=jnp.float32) + bias
        m_prev = m_sc[h]
        m_new = jnp.maximum(m_prev, jnp.max(s, axis=-1, keepdims=True))
        alpha = jnp.exp(m_prev - m_new)
        p = jnp.exp(s - m_new)
        l_sc[h] = alpha * l_sc[h] + jnp.sum(p, axis=-1, keepdims=True)
        acc_sc[h] = alpha * acc_sc[h] + jnp.dot(p.astype(v.dtype), v,
                                                preferred_element_type=jnp.float32)
        m_sc[h] = m_new

    @pl.when(kv == pl.num_programs(3) - 1)
    def _():
        for h in range(hg):
            inv = pl.reciprocal(l_sc[h], approx=True)
            o_ref[:, h * hd:(h + 1) * hd] = (acc_sc[h] * inv).astype(o_ref.dtype)


def attention(qkv, bias, *, B, S, nh, hd):
    """qkv:(N,3H) bf16 with columns [q|k|v]; bias:(B,1,S) f32 -> ctx:(N,H) bf16.
    The 1/sqrt(hd) scale is already folded into the Q projection weights."""
    N, three_h = qkv.shape
    H = nh * hd
    hg = _heads_per_step(nh, hd)
    nhg = nh // hg
    tq = _tile(S, 256, 8)
    tkv = _tile(S, 512, 8)
    n_q, n_kv = S // tq, S // tkv

    if (hg * hd) % 128 == 0:
        cw = hg * hd                          # per-group column blocks (128-lane dense)
        q_col, k_col, v_col = 0, nhg, 2 * nhg  # column-block offsets (in cw units)
        q_off = k_off = v_off = 0              # in-block element offsets
    else:
        cw = three_h                          # tiny models: full qkv width (legal block)
        q_col = k_col = v_col = 0
        q_off, k_off, v_off = 0, H, 2 * H

    kw = dict(hg=hg, hd=hd, q_off=q_off, k_off=k_off, v_off=v_off)
    ow = hg * hd                              # == H in the full-width fallback case

    if n_kv == 1:
        grid = (B, nhg, n_q)
        in_specs = [
            pl.BlockSpec((tq, cw), lambda b, g, qi: (b * n_q + qi, q_col + g)),
            pl.BlockSpec((tkv, cw), lambda b, g, qi: (b * n_kv, k_col + g)),
            pl.BlockSpec((tkv, cw), lambda b, g, qi: (b * n_kv, v_col + g)),
            pl.BlockSpec((pl.Squeezed(), 1, tkv), lambda b, g, qi: (b, 0, 0)),
        ]
        out_spec = pl.BlockSpec((tq, ow), lambda b, g, qi: (b * n_q + qi, g))
        kernel = functools.partial(_attn_kernel_1kv, **kw)
        scratch = []
        dims = ("parallel", "parallel", "parallel")
    else:
        grid = (B, nhg, n_q, n_kv)
        in_specs = [
            pl.BlockSpec((tq, cw), lambda b, g, qi, ki: (b * n_q + qi, q_col + g)),
            pl.BlockSpec((tkv, cw), lambda b, g, qi, ki: (b * n_kv + ki, k_col + g)),
            pl.BlockSpec((tkv, cw), lambda b, g, qi, ki: (b * n_kv + ki, v_col + g)),
            pl.BlockSpec((pl.Squeezed(), 1, tkv), lambda b, g, qi, ki: (b, 0, ki)),
        ]
        out_spec = pl.BlockSpec((tq, ow), lambda b, g, qi, ki: (b * n_q + qi, g))
        kernel = functools.partial(_attn_kernel_flash, **kw)
        scratch = [pltpu.VMEM((hg, tq, 1), jnp.float32),
                   pltpu.VMEM((hg, tq, 1), jnp.float32),
                   pltpu.VMEM((hg, tq, hd), jnp.float32)]
        dims = ("parallel", "parallel", "parallel", "arbitrary")

    return pl.pallas_call(
        kernel,
        out_shape=jax.ShapeDtypeStruct((N, H), jnp.bfloat16),
        grid=grid,
        in_specs=in_specs,
        out_specs=out_spec,
        scratch_shapes=scratch,
        compiler_params=_cparams(*dims),
    )(qkv, qkv, qkv, bias)


# ----------------------------------------------------------------------------
# Fused pooler (CLS -> dense -> tanh) + scalar regression head
# ----------------------------------------------------------------------------
def _pooler_head_kernel(cls_ref, wp_ref, bp_ref, wd_ref, bd_ref, o_ref):
    pooled = jnp.tanh(
        jnp.dot(cls_ref[...], wp_ref[...], preferred_element_type=jnp.float32)
        + bp_ref[...])
    score = jnp.sum(pooled * wd_ref[...], axis=-1, keepdims=True) + bd_ref[...]
    o_ref[...] = score.astype(o_ref.dtype)


def pooler_head(cls_state, wp, bp, wd, bd):
    b, h = cls_state.shape
    return pl.pallas_call(
        _pooler_head_kernel,
        out_shape=jax.ShapeDtypeStruct((b, 1), jnp.float32),
        in_specs=[
            pl.BlockSpec((b, h), lambda: (0, 0)),
            pl.BlockSpec((h, h), lambda: (0, 0)),
            pl.BlockSpec((1, h), lambda: (0, 0)),
            pl.BlockSpec((1, h), lambda: (0, 0)),
            pl.BlockSpec((1, 1), lambda: (0, 0)),
        ],
        out_specs=pl.BlockSpec((b, 1), lambda: (0, 0)),
        compiler_params=_cparams(),
    )(cls_state, wp, bp.reshape(1, h), wd.reshape(1, h), bd.reshape(1, 1))


# ----------------------------------------------------------------------------
# Model: parameters + forward
# ----------------------------------------------------------------------------
CFG = dict(vocab_size=100, hidden=32, layers=2, heads=2,
           intermediate=64, max_pos=16, type_vocab=2)


def init_params(key, cfg):
    H, I = cfg["hidden"], cfg["intermediate"]
    nh = cfg["heads"]
    hd = H // nh
    std = 0.02
    keys = iter(jax.random.split(key, 64))

    def w(shape, dtype=jnp.bfloat16):
        return (std * jax.random.normal(next(keys), shape, jnp.float32)).astype(dtype)

    p = {
        "word_emb": w((cfg["vocab_size"], H), jnp.float32),
        "pos_emb": w((cfg["max_pos"], H), jnp.float32),
        "type_emb": w((cfg["type_vocab"], H), jnp.float32),
        "emb_ln_g": jnp.ones((H,), jnp.float32),
        "emb_ln_b": jnp.zeros((H,), jnp.float32),
        "pooler_w": w((H, H)),
        "pooler_b": jnp.zeros((H,), jnp.float32),
        "dense_w": w((H,), jnp.float32),
        "dense_b": jnp.zeros((1,), jnp.float32),
        "layers": [],
    }
    attn_scale = 1.0 / (hd ** 0.5)
    for _ in range(cfg["layers"]):
        # fused QKV: q | k | v concatenated along the output axis.
        w_qkv = w((H, 3 * H))
        b_qkv = jnp.zeros((3 * H,), jnp.float32)
        # Fold the 1/sqrt(hd) attention scale into the Q projection at prep time
        # (a checkpoint converter would do the same) -> no per-kv-tile multiply.
        w_qkv = w_qkv.at[:, :H].multiply(attn_scale)
        b_qkv = b_qkv.at[:H].multiply(attn_scale)
        p["layers"].append({
            "w_qkv": w_qkv, "b_qkv": b_qkv,
            "wo": w((H, H)), "bo": jnp.zeros((H,), jnp.float32),
            "ln1_g": jnp.ones((H,), jnp.float32),
            "ln1_b": jnp.zeros((H,), jnp.float32),
            "wi": w((H, I)), "bi": jnp.zeros((I,), jnp.float32),
            "wo2": w((I, H)), "bo2": jnp.zeros((H,), jnp.float32),
            "ln2_g": jnp.ones((H,), jnp.float32),
            "ln2_b": jnp.zeros((H,), jnp.float32),
        })
    return p


def bleurt_forward(params, input_ids, input_mask, segment_ids, cfg):
    B, S = input_ids.shape
    H, nh = cfg["hidden"], cfg["heads"]
    hd = H // nh
    N = B * S

    # --- embeddings: gathers stay in XLA (tiny tables); add + LN fused in Pallas ---
    # TODO(synk): embedding lookup uses jnp.take outside the kernel (no clean Pallas
    # gather for small vocab tables).
    we = jnp.take(params["word_emb"], input_ids, axis=0)          # (B,S,H) f32
    te = jnp.take(params["type_emb"], segment_ids, axis=0)        # (B,S,H) f32
    pe = params["pos_emb"][:S][None, :, :]                        # (1,S,H) f32
    x = embed_layernorm(we, te, pe, params["emb_ln_g"], params["emb_ln_b"])
    x = x.reshape(N, H)                                           # bf16, free reshape

    # additive attention-mask bias, computed once for all layers
    bias = ((1.0 - input_mask.astype(jnp.float32)) * -10000.0).reshape(B, 1, S)

    # --- encoder layers (no activation relayouts between kernels) ---
    for lp in params["layers"]:
        qkv = matmul_bias_act(x, lp["w_qkv"], lp["b_qkv"])        # (N,3H) bf16
        ctx = attention(qkv, bias, B=B, S=S, nh=nh, hd=hd)        # (N,H)  bf16
        x = matmul_add_ln(ctx, lp["wo"], lp["bo"], x,
                          lp["ln1_g"], lp["ln1_b"])
        inter = matmul_bias_act(x, lp["wi"], lp["bi"], act="gelu")
        x = matmul_add_ln(inter, lp["wo2"], lp["bo2"], x,
                          lp["ln2_g"], lp["ln2_b"])

    # --- pooler (CLS -> dense -> tanh) fused with the scalar regression head ---
    cls_state = x.reshape(B, S, H)[:, 0, :]                       # (B,H) bf16
    return pooler_head(cls_state, params["pooler_w"], params["pooler_b"],
                       params["dense_w"], params["dense_b"])      # (B,1) f32


if __name__ == "__main__":
    key = jax.random.PRNGKey(0)
    pkey, ikey = jax.random.split(key)

    B, S = 2, 8
    params = init_params(pkey, CFG)

    input_ids = jax.random.randint(ikey, (B, S), 0, CFG["vocab_size"],
                                   dtype=jnp.int32)
    input_mask = jnp.array([[1, 1, 1, 1, 1, 1, 1, 1],
                            [1, 1, 1, 1, 1, 1, 0, 0]], dtype=jnp.int32)
    segment_ids = jnp.array([[0, 0, 0, 0, 1, 1, 1, 1],
                             [0, 0, 0, 1, 1, 1, 1, 1]], dtype=jnp.int32)

    fwd = jax.jit(functools.partial(bleurt_forward, cfg=CFG))
    out = fwd(params, input_ids, input_mask, segment_ids)
    out = jax.block_until_ready(out)
    assert out.shape == (B, 1) and out.dtype == jnp.float32
    print("KERNEL_OK")
</pallas_src>

<mosaic_0001>
module attributes {stable_mosaic.version = 11 : i64} {
  func.func @_emb_ln_kernel(%arg0: i32, %arg1: i32, %arg2: memref<1x8x32xf32, #tpu.memory_space<vmem>>, %arg3: memref<1x8x32xf32, #tpu.memory_space<vmem>>, %arg4: memref<1x8x32xf32, #tpu.memory_space<vmem>>, %arg5: memref<1x32xf32, #tpu.memory_space<vmem>>, %arg6: memref<1x32xf32, #tpu.memory_space<vmem>>, %arg7: memref<1x8x32xbf16, #tpu.memory_space<vmem>>) attributes {dimension_semantics = [#tpu.dimension_semantics<parallel>, #tpu.dimension_semantics<parallel>], iteration_bounds = array<i64: 2, 1>, scalar_prefetch = 0 : i64, scratch_operands = 0 : i64, tpu.core_type = #tpu.core_type<tc>, window_params = [{transform_indices = @transform_0, window_bounds = array<i64: 1, 8, 32>}, {transform_indices = @transform_1, window_bounds = array<i64: 1, 8, 32>}, {transform_indices = @transform_2, window_bounds = array<i64: 1, 8, 32>}, {pipeline_mode = #tpu.pipeline_mode<synchronous>, transform_indices = @transform_3, window_bounds = array<i64: 1, 32>}, {pipeline_mode = #tpu.pipeline_mode<synchronous>, transform_indices = @transform_4, window_bounds = array<i64: 1, 32>}, {transform_indices = @transform_5, window_bounds = array<i64: 1, 8, 32>}]} {
    %c0 = arith.constant 0 : index
    %c0_0 = arith.constant 0 : index
    %c0_1 = arith.constant 0 : index
    %0 = vector.load %arg2[%c0, %c0_0, %c0_1] : memref<1x8x32xf32, #tpu.memory_space<vmem>>, vector<1x8x32xf32>
    %1 = vector.shape_cast %0 : vector<1x8x32xf32> to vector<8x32xf32>
    %c0_2 = arith.constant 0 : index
    %c0_3 = arith.constant 0 : index
    %c0_4 = arith.constant 0 : index
    %2 = vector.load %arg3[%c0_2, %c0_3, %c0_4] : memref<1x8x32xf32, #tpu.memory_space<vmem>>, vector<1x8x32xf32>
    %3 = vector.shape_cast %2 : vector<1x8x32xf32> to vector<8x32xf32>
    %4 = arith.addf %1, %3 : vector<8x32xf32>
    %c0_5 = arith.constant 0 : index
    %c0_6 = arith.constant 0 : index
    %c0_7 = arith.constant 0 : index
    %5 = vector.load %arg4[%c0_5, %c0_6, %c0_7] : memref<1x8x32xf32, #tpu.memory_space<vmem>>, vector<1x8x32xf32>
    %6 = vector.shape_cast %5 : vector<1x8x32xf32> to vector<8x32xf32>
    %7 = arith.addf %4, %6 : vector<8x32xf32>
    %cst = arith.constant dense<0.000000e+00> : vector<8xf32>
    %8 = vector.multi_reduction <add>, %7, %cst [1] : vector<8x32xf32> to vector<8xf32>
    %9 = vector.shape_cast %8 : vector<8xf32> to vector<8x1xf32>
    %cst_8 = arith.constant 3.200000e+01 : f32
    %10 = vector.broadcast %cst_8 : f32 to vector<8x1xf32>
    %11 = arith.divf %9, %10 : vector<8x1xf32>
    %12 = vector.broadcast %11 : vector<8x1xf32> to vector<8x32xf32>
    %13 = arith.subf %7, %12 : vector<8x32xf32>
    %14 = arith.mulf %13, %13 : vector<8x32xf32>
    %cst_9 = arith.constant dense<0.000000e+00> : vector<8xf32>
    %15 = vector.multi_reduction <add>, %14, %cst_9 [1] : vector<8x32xf32> to vector<8xf32>
    %16 = vector.shape_cast %15 : vector<8xf32> to vector<8x1xf32>
    %cst_10 = arith.constant 3.200000e+01 : f32
    %17 = vector.broadcast %cst_10 : f32 to vector<8x1xf32>
    %18 = arith.divf %16, %17 : vector<8x1xf32>
    %cst_11 = arith.constant 9.99999996E-13 : f32
    %19 = vector.broadcast %cst_11 : f32 to vector<8x1xf32>
    %20 = arith.addf %18, %19 : vector<8x1xf32>
    %21 = math.rsqrt %20 : vector<8x1xf32>
    %22 = vector.broadcast %21 : vector<8x1xf32> to vector<8x32xf32>
    %23 = arith.mulf %13, %22 : vector<8x32xf32>
    %c0_12 = arith.constant 0 : index
    %c0_13 = arith.constant 0 : index
    %24 = vector.load %arg5[%c0_12, %c0_13] : memref<1x32xf32, #tpu.memory_space<vmem>>, vector<1x32xf32>
    %25 = vector.broadcast %24 : vector<1x32xf32> to vector<8x32xf32>
    %26 = arith.mulf %23, %25 : vector<8x32xf32>
    %c0_14 = arith.constant 0 : index
    %c0_15 = arith.constant 0 : index
    %27 = vector.load %arg6[%c0_14, %c0_15] : memref<1x32xf32, #tpu.memory_space<vmem>>, vector<1x32xf32>
    %28 = vector.broadcast %27 : vector<1x32xf32> to vector<8x32xf32>
    %29 = arith.addf %26, %28 : vector<8x32xf32>
    %30 = arith.truncf %29 : vector<8x32xf32> to vector<8x32xbf16>
    %c0_16 = arith.constant 0 : index
    %c0_17 = arith.constant 0 : index
    %c0_18 = arith.constant 0 : index
    %31 = vector.load %arg7[%c0_16, %c0_17, %c0_18] : memref<1x8x32xbf16, #tpu.memory_space<vmem>>, vector<1x8x32xbf16>
    %32 = vector.shape_cast %31 : vector<1x8x32xbf16> to vector<8x32xbf16>
    %33 = vector.shape_cast %30 : vector<8x32xbf16> to vector<1x8x32xbf16>
    tpu.vector_store %arg7[%c0_16, %c0_17, %c0_18], %33 {strides = array<i32>} : memref<1x8x32xbf16, #tpu.memory_space<vmem>>, vector<1x8x32xbf16>,
    return
  }
  func.func @transform_0(%arg0: i32, %arg1: i32) -> (i32, i32, i32) {
    %c0_i32 = arith.constant 0 : i32
    %c0_i32_0 = arith.constant 0 : i32
    return %arg0, %arg1, %c0_i32 : i32, i32, i32
  }
  func.func @transform_1(%arg0: i32, %arg1: i32) -> (i32, i32, i32) {
    %c0_i32 = arith.constant 0 : i32
    %c0_i32_0 = arith.constant 0 : i32
    return %arg0, %arg1, %c0_i32 : i32, i32, i32
  }
  func.func @transform_2(%arg0: i32, %arg1: i32) -> (i32, i32, i32) {
    %c0_i32 = arith.constant 0 : i32
    %c0_i32_0 = arith.constant 0 : i32
    %c0_i32_1 = arith.constant 0 : i32
    return %c0_i32, %arg1, %c0_i32_0 : i32, i32, i32
  }
  func.func @transform_3(%arg0: i32, %arg1: i32) -> (i32, i32) {
    %c0_i32 = arith.constant 0 : i32
    %c0_i32_0 = arith.constant 0 : i32
    %c0_i32_1 = arith.constant 0 : i32
    return %c0_i32, %c0_i32_0 : i32, i32
  }
  func.func @transform_4(%arg0: i32, %arg1: i32) -> (i32, i32) {
    %c0_i32 = arith.constant 0 : i32
    %c0_i32_0 = arith.constant 0 : i32
    %c0_i32_1 = arith.constant 0 : i32
    return %c0_i32, %c0_i32_0 : i32, i32
  }
  func.func @transform_5(%arg0: i32, %arg1: i32) -> (i32, i32, i32) {
    %c0_i32 = arith.constant 0 : i32
    %c0_i32_0 = arith.constant 0 : i32
    return %arg0, %arg1, %c0_i32 : i32, i32, i32
  }
}

module attributes {stable_mosaic.version = 11 : i64} {
  func.func @_matmul_bias_act_kernel(%arg0: i32, %arg1: i32, %arg2: memref<16x32xbf16, #tpu.memory_space<vmem>>, %arg3: memref<32x96xbf16, #tpu.memory_space<vmem>>, %arg4: memref<1x96xf32, #tpu.memory_space<vmem>>, %arg5: memref<16x96xbf16, #tpu.memory_space<vmem>>) attributes {dimension_semantics = [#tpu.dimension_semantics<parallel>, #tpu.dimension_semantics<parallel>], iteration_bounds = array<i64: 1, 1>, scalar_prefetch = 0 : i64, scratch_operands = 0 : i64, tpu.core_type = #tpu.core_type<tc>, window_params = [{transform_indices = @transform_0, window_bounds = array<i64: 16, 32>}, {transform_indices = @transform_1, window_bounds = array<i64: 32, 96>}, {transform_indices = @transform_2, window_bounds = array<i64: 1, 96>}, {transform_indices = @transform_3, window_bounds = array<i64: 16, 96>}]} {
    %c0 = arith.constant 0 : index
    %c0_0 = arith.constant 0 : index
    %0 = vector.load %arg2[%c0, %c0_0] : memref<16x32xbf16, #tpu.memory_space<vmem>>, vector<16x32xbf16>
    %c0_1 = arith.constant 0 : index
    %c0_2 = arith.constant 0 : index
    %1 = vector.load %arg3[%c0_1, %c0_2] : memref<32x96xbf16, #tpu.memory_space<vmem>>, vector<32x96xbf16>
    %cst = arith.constant dense<0.000000e+00> : vector<16x96xf32>
    %2 = tpu.matmul %0, %1, %cst {dimension_numbers = #tpu.dot_dimension_numbers<[1], [0], [0], [1], [0, 0, 1, 1], [], []>} : vector<16x32xbf16>, vector<32x96xbf16>, vector<16x96xf32> -> vector<16x96xf32>
    %c0_3 = arith.constant 0 : index
    %c0_4 = arith.constant 0 : index
    %3 = vector.load %arg4[%c0_3, %c0_4] : memref<1x96xf32, #tpu.memory_space<vmem>>, vector<1x96xf32>
    %4 = vector.broadcast %3 : vector<1x96xf32> to vector<16x96xf32>
    %5 = arith.addf %2, %4 : vector<16x96xf32>
    %6 = arith.truncf %5 : vector<16x96xf32> to vector<16x96xbf16>
    %c0_5 = arith.constant 0 : index
    %c0_6 = arith.constant 0 : index
    %7 = vector.load %arg5[%c0_5, %c0_6] : memref<16x96xbf16, #tpu.memory_space<vmem>>, vector<16x96xbf16>
    tpu.vector_store %arg5[%c0_5, %c0_6], %6 {strides = array<i32>} : memref<16x96xbf16, #tpu.memory_space<vmem>>, vector<16x96xbf16>,
    return
  }
  func.func @transform_0(%arg0: i32, %arg1: i32) -> (i32, i32) {
    %c0_i32 = arith.constant 0 : i32
    %c0_i32_0 = arith.constant 0 : i32
    return %arg1, %c0_i32 : i32, i32
  }
  func.func @transform_1(%arg0: i32, %arg1: i32) -> (i32, i32) {
    %c0_i32 = arith.constant 0 : i32
    %c0_i32_0 = arith.constant 0 : i32
    return %c0_i32, %arg0 : i32, i32
  }
  func.func @transform_2(%arg0: i32, %arg1: i32) -> (i32, i32) {
    %c0_i32 = arith.constant 0 : i32
    %c0_i32_0 = arith.constant 0 : i32
    return %c0_i32, %arg0 : i32, i32
  }
  func.func @transform_3(%arg0: i32, %arg1: i32) -> (i32, i32) {
    %c0_i32 = arith.constant 0 : i32
    return %arg1, %arg0 : i32, i32
  }
}

module attributes {stable_mosaic.version = 11 : i64} {
  func.func @_matmul_add_ln_kernel(%arg0: i32, %arg1: memref<16x32xbf16, #tpu.memory_space<vmem>>, %arg2: memref<32x32xbf16, #tpu.memory_space<vmem>>, %arg3: memref<1x32xf32, #tpu.memory_space<vmem>>, %arg4: memref<16x32xbf16, #tpu.memory_space<vmem>>, %arg5: memref<1x32xf32, #tpu.memory_space<vmem>>, %arg6: memref<1x32xf32, #tpu.memory_space<vmem>>, %arg7: memref<16x32xbf16, #tpu.memory_space<vmem>>) attributes {dimension_semantics = [#tpu.dimension_semantics<parallel>], iteration_bounds = array<i64: 1>, scalar_prefetch = 0 : i64, scratch_operands = 0 : i64, tpu.core_type = #tpu.core_type<tc>, window_params = [{transform_indices = @transform_0, window_bounds = array<i64: 16, 32>}, {pipeline_mode = #tpu.pipeline_mode<synchronous>, transform_indices = @transform_1, window_bounds = array<i64: 32, 32>}, {pipeline_mode = #tpu.pipeline_mode<synchronous>, transform_indices = @transform_2, window_bounds = array<i64: 1, 32>}, {transform_indices = @transform_3, window_bounds = array<i64: 16, 32>}, {pipeline_mode = #tpu.pipeline_mode<synchronous>, transform_indices = @transform_4, window_bounds = array<i64: 1, 32>}, {pipeline_mode = #tpu.pipeline_mode<synchronous>, transform_indices = @transform_5, window_bounds = array<i64: 1, 32>}, {transform_indices = @transform_6, window_bounds = array<i64: 16, 32>}]} {
    %c0 = arith.constant 0 : index
    %c0_0 = arith.constant 0 : index
    %0 = vector.load %arg1[%c0, %c0_0] : memref<16x32xbf16, #tpu.memory_space<vmem>>, vector<16x32xbf16>
    %c0_1 = arith.constant 0 : index
    %c0_2 = arith.constant 0 : index
    %1 = vector.load %arg2[%c0_1, %c0_2] : memref<32x32xbf16, #tpu.memory_space<vmem>>, vector<32x32xbf16>
    %cst = arith.constant dense<0.000000e+00> : vector<16x32xf32>
    %2 = tpu.matmul %0, %1, %cst {dimension_numbers = #tpu.dot_dimension_numbers<[1], [0], [0], [1], [0, 0, 1, 1], [], []>} : vector<16x32xbf16>, vector<32x32xbf16>, vector<16x32xf32> -> vector<16x32xf32>
    %c0_3 = arith.constant 0 : index
    %c0_4 = arith.constant 0 : index
    %3 = vector.load %arg3[%c0_3, %c0_4] : memref<1x32xf32, #tpu.memory_space<vmem>>, vector<1x32xf32>
    %4 = vector.broadcast %3 : vector<1x32xf32> to vector<16x32xf32>
    %5 = arith.addf %2, %4 : vector<16x32xf32>
    %c0_5 = arith.constant 0 : index
    %c0_6 = arith.constant 0 : index
    %6 = vector.load %arg4[%c0_5, %c0_6] : memref<16x32xbf16, #tpu.memory_space<vmem>>, vector<16x32xbf16>
    %7 = arith.extf %6 : vector<16x32xbf16> to vector<16x32xf32>
    %8 = arith.addf %5, %7 : vector<16x32xf32>
    %cst_7 = arith.constant dense<0.000000e+00> : vector<16xf32>
    %9 = vector.multi_reduction <add>, %8, %cst_7 [1] : vector<16x32xf32> to vector<16xf32>
    %10 = vector.shape_cast %9 : vector<16xf32> to vector<16x1xf32>
    %cst_8 = arith.constant 3.200000e+01 : f32
    %11 = vector.broadcast %cst_8 : f32 to vector<16x1xf32>
    %12 = arith.divf %10, %11 : vector<16x1xf32>
    %13 = vector.broadcast %12 : vector<16x1xf32> to vector<16x32xf32>
    %14 = arith.subf %8, %13 : vector<16x32xf32>
    %15 = arith.mulf %14, %14 : vector<16x32xf32>
    %cst_9 = arith.constant dense<0.000000e+00> : vector<16xf32>
    %16 = vector.multi_reduction <add>, %15, %cst_9 [1] : vector<16x32xf32> to vector<16xf32>
    %17 = vector.shape_cast %16 : vector<16xf32> to vector<16x1xf32>
    %cst_10 = arith.constant 3.200000e+01 : f32
    %18 = vector.broadcast %cst_10 : f32 to vector<16x1xf32>
    %19 = arith.divf %17, %18 : vector<16x1xf32>
    %cst_11 = arith.constant 9.99999996E-13 : f32
    %20 = vector.broadcast %cst_11 : f32 to vector<16x1xf32>
    %21 = arith.addf %19, %20 : vector<16x1xf32>
    %22 = math.rsqrt %21 : vector<16x1xf32>
    %23 = vector.broadcast %22 : vector<16x1xf32> to vector<16x32xf32>
    %24 = arith.mulf %14, %23 : vector<16x32xf32>
    %c0_12 = arith.constant 0 : index
    %c0_13 = arith.constant 0 : index
    %25 = vector.load %arg5[%c0_12, %c0_13] : memref<1x32xf32, #tpu.memory_space<vmem>>, vector<1x32xf32>
    %26 = vector.broadcast %25 : vector<1x32xf32> to vector<16x32xf32>
    %27 = arith.mulf %24, %26 : vector<16x32xf32>
    %c0_14 = arith.constant 0 : index
    %c0_15 = arith.constant 0 : index
    %28 = vector.load %arg6[%c0_14, %c0_15] : memref<1x32xf32, #tpu.memory_space<vmem>>, vector<1x32xf32>
    %29 = vector.broadcast %28 : vector<1x32xf32> to vector<16x32xf32>
    %30 = arith.addf %27, %29 : vector<16x32xf32>
    %31 = arith.truncf %30 : vector<16x32xf32> to vector<16x32xbf16>
    %c0_16 = arith.constant 0 : index
    %c0_17 = arith.constant 0 : index
    %32 = vector.load %arg7[%c0_16, %c0_17] : memref<16x32xbf16, #tpu.memory_space<vmem>>, vector<16x32xbf16>
    tpu.vector_store %arg7[%c0_16, %c0_17], %31 {strides = array<i32>} : memref<16x32xbf16, #tpu.memory_space<vmem>>, vector<16x32xbf16>,
    return
  }
  func.func @transform_0(%arg0: i32) -> (i32, i32) {
    %c0_i32 = arith.constant 0 : i32
    %c0_i32_0 = arith.constant 0 : i32
    return %arg0, %c0_i32 : i32, i32
  }
  func.func @transform_1(%arg0: i32) -> (i32, i32) {
    %c0_i32 = arith.constant 0 : i32
    %c0_i32_0 = arith.constant 0 : i32
    %c0_i32_1 = arith.constant 0 : i32
    return %c0_i32, %c0_i32_0 : i32, i32
  }
  func.func @transform_2(%arg0: i32) -> (i32, i32) {
    %c0_i32 = arith.constant 0 : i32
    %c0_i32_0 = arith.constant 0 : i32
    %c0_i32_1 = arith.constant 0 : i32
    return %c0_i32, %c0_i32_0 : i32, i32
  }
  func.func @transform_3(%arg0: i32) -> (i32, i32) {
    %c0_i32 = arith.constant 0 : i32
    %c0_i32_0 = arith.constant 0 : i32
    return %arg0, %c0_i32 : i32, i32
  }
  func.func @transform_4(%arg0: i32) -> (i32, i32) {
    %c0_i32 = arith.constant 0 : i32
    %c0_i32_0 = arith.constant 0 : i32
    %c0_i32_1 = arith.constant 0 : i32
    return %c0_i32, %c0_i32_0 : i32, i32
  }
  func.func @transform_5(%arg0: i32) -> (i32, i32) {
    %c0_i32 = arith.constant 0 : i32
    %c0_i32_0 = arith.constant 0 : i32
    %c0_i32_1 = arith.constant 0 : i32
    return %c0_i32, %c0_i32_0 : i32, i32
  }
  func.func @transform_6(%arg0: i32) -> (i32, i32) {
    %c0_i32 = arith.constant 0 : i32
    %c0_i32_0 = arith.constant 0 : i32
    return %arg0, %c0_i32 : i32, i32
  }
}

module attributes {stable_mosaic.version = 11 : i64} {
  func.func @_attn_kernel_1kv(%arg0: i32, %arg1: i32, %arg2: i32, %arg3: memref<8x96xbf16, #tpu.memory_space<vmem>>, %arg4: memref<8x96xbf16, #tpu.memory_space<vmem>>, %arg5: memref<8x96xbf16, #tpu.memory_space<vmem>>, %arg6: memref<1x1x8xf32, #tpu.memory_space<vmem>>, %arg7: memref<8x32xbf16, #tpu.memory_space<vmem>>) attributes {dimension_semantics = [#tpu.dimension_semantics<parallel>, #tpu.dimension_semantics<parallel>, #tpu.dimension_semantics<parallel>], iteration_bounds = array<i64: 2, 1, 1>, scalar_prefetch = 0 : i64, scratch_operands = 0 : i64, tpu.core_type = #tpu.core_type<tc>, window_params = [{transform_indices = @transform_0, window_bounds = array<i64: 8, 96>}, {transform_indices = @transform_1, window_bounds = array<i64: 8, 96>}, {transform_indices = @transform_2, window_bounds = array<i64: 8, 96>}, {transform_indices = @transform_3, window_bounds = array<i64: 1, 1, 8>}, {transform_indices = @transform_4, window_bounds = array<i64: 8, 32>}]} {
    %c0 = arith.constant 0 : index
    %c0_0 = arith.constant 0 : index
    %c0_1 = arith.constant 0 : index
    %0 = vector.load %arg6[%c0, %c0_0, %c0_1] : memref<1x1x8xf32, #tpu.memory_space<vmem>>, vector<1x1x8xf32>
    %1 = vector.shape_cast %0 : vector<1x1x8xf32> to vector<1x8xf32>
    %c0_2 = arith.constant 0 : index
    %c0_3 = arith.constant 0 : index
    %2 = vector.load %arg3[%c0_2, %c0_3] : memref<8x96xbf16, #tpu.memory_space<vmem>>, vector<8x16xbf16>
    %c0_4 = arith.constant 0 : index
    %c32 = arith.constant 32 : index
    %3 = vector.load %arg4[%c0_4, %c32] : memref<8x96xbf16, #tpu.memory_space<vmem>>, vector<8x16xbf16>
    %c0_5 = arith.constant 0 : index
    %c64 = arith.constant 64 : index
    %4 = vector.load %arg5[%c0_5, %c64] : memref<8x96xbf16, #tpu.memory_space<vmem>>, vector<8x16xbf16>
    %cst = arith.constant dense<0.000000e+00> : vector<8x8xf32>
    %5 = tpu.matmul %2, %3, %cst {dimension_numbers = #tpu.dot_dimension_numbers<[1], [1], [0], [0], [0, 0, 1, 0], [], []>} : vector<8x16xbf16>, vector<8x16xbf16>, vector<8x8xf32> -> vector<8x8xf32>
    %6 = vector.broadcast %1 : vector<1x8xf32> to vector<8x8xf32>
    %7 = arith.addf %5, %6 : vector<8x8xf32>
    %cst_6 = arith.constant dense<0xFF800000> : vector<8xf32>
    %8 = vector.multi_reduction <maximumf>, %7, %cst_6 [1] : vector<8x8xf32> to vector<8xf32>
    %9 = vector.shape_cast %8 : vector<8xf32> to vector<8x1xf32>
    %10 = vector.broadcast %9 : vector<8x1xf32> to vector<8x8xf32>
    %11 = arith.subf %7, %10 : vector<8x8xf32>
    %12 = math.exp %11 : vector<8x8xf32>
    %13 = arith.truncf %12 : vector<8x8xf32> to vector<8x8xbf16>
    %cst_7 = arith.constant dense<0.000000e+00> : vector<8x16xf32>
    %14 = tpu.matmul %13, %4, %cst_7 {dimension_numbers = #tpu.dot_dimension_numbers<[1], [0], [0], [1], [0, 0, 1, 1], [], []>} : vector<8x8xbf16>, vector<8x16xbf16>, vector<8x16xf32> -> vector<8x16xf32>
    %cst_8 = arith.constant dense<0.000000e+00> : vector<8xf32>
    %15 = vector.multi_reduction <add>, %12, %cst_8 [1] : vector<8x8xf32> to vector<8xf32>
    %16 = vector.shape_cast %15 : vector<8xf32> to vector<8x1xf32>
    %17 = tpu.reciprocal %16 {approx = true} : vector<8x1xf32> -> vector<8x1xf32>
    %18 = vector.broadcast %17 : vector<8x1xf32> to vector<8x16xf32>
    %19 = arith.mulf %14, %18 : vector<8x16xf32>
    %20 = arith.truncf %19 : vector<8x16xf32> to vector<8x16xbf16>
    %c0_9 = arith.constant 0 : index
    %c0_10 = arith.constant 0 : index
    %21 = vector.load %arg7[%c0_9, %c0_10] : memref<8x32xbf16, #tpu.memory_space<vmem>>, vector<8x16xbf16>
    tpu.vector_store %arg7[%c0_9, %c0_10], %20 {strides = array<i32>} : memref<8x32xbf16, #tpu.memory_space<vmem>>, vector<8x16xbf16>,
    %c0_11 = arith.constant 0 : index
    %c16 = arith.constant 16 : index
    %22 = vector.load %arg3[%c0_11, %c16] : memref<8x96xbf16, #tpu.memory_space<vmem>>, vector<8x16xbf16>
    %c0_12 = arith.constant 0 : index
    %c48 = arith.constant 48 : index
    %23 = vector.load %arg4[%c0_12, %c48] : memref<8x96xbf16, #tpu.memory_space<vmem>>, vector<8x16xbf16>
    %c0_13 = arith.constant 0 : index
    %c80 = arith.constant 80 : index
    %24 = vector.load %arg5[%c0_13, %c80] : memref<8x96xbf16, #tpu.memory_space<vmem>>, vector<8x16xbf16>
    %cst_14 = arith.constant dense<0.000000e+00> : vector<8x8xf32>
    %25 = tpu.matmul %22, %23, %cst_14 {dimension_numbers = #tpu.dot_dimension_numbers<[1], [1], [0], [0], [0, 0, 1, 0], [], []>} : vector<8x16xbf16>, vector<8x16xbf16>, vector<8x8xf32> -> vector<8x8xf32>
    %26 = vector.broadcast %1 : vector<1x8xf32> to vector<8x8xf32>
    %27 = arith.addf %25, %26 : vector<8x8xf32>
    %cst_15 = arith.constant dense<0xFF800000> : vector<8xf32>
    %28 = vector.multi_reduction <maximumf>, %27, %cst_15 [1] : vector<8x8xf32> to vector<8xf32>
    %29 = vector.shape_cast %28 : vector<8xf32> to vector<8x1xf32>
    %30 = vector.broadcast %29 : vector<8x1xf32> to vector<8x8xf32>
    %31 = arith.subf %27, %30 : vector<8x8xf32>
    %32 = math.exp %31 : vector<8x8xf32>
    %33 = arith.truncf %32 : vector<8x8xf32> to vector<8x8xbf16>
    %cst_16 = arith.constant dense<0.000000e+00> : vector<8x16xf32>
    %34 = tpu.matmul %33, %24, %cst_16 {dimension_numbers = #tpu.dot_dimension_numbers<[1], [0], [0], [1], [0, 0, 1, 1], [], []>} : vector<8x8xbf16>, vector<8x16xbf16>, vector<8x16xf32> -> vector<8x16xf32>
    %cst_17 = arith.constant dense<0.000000e+00> : vector<8xf32>
    %35 = vector.multi_reduction <add>, %32, %cst_17 [1] : vector<8x8xf32> to vector<8xf32>
    %36 = vector.shape_cast %35 : vector<8xf32> to vector<8x1xf32>
    %37 = tpu.reciprocal %36 {approx = true} : vector<8x1xf32> -> vector<8x1xf32>
    %38 = vector.broadcast %37 : vector<8x1xf32> to vector<8x16xf32>
    %39 = arith.mulf %34, %38 : vector<8x16xf32>
    %40 = arith.truncf %39 : vector<8x16xf32> to vector<8x16xbf16>
    %c0_18 = arith.constant 0 : index
    %c16_19 = arith.constant 16 : index
    %41 = vector.load %arg7[%c0_18, %c16_19] : memref<8x32xbf16, #tpu.memory_space<vmem>>, vector<8x16xbf16>
    tpu.vector_store %arg7[%c0_18, %c16_19], %40 {strides = array<i32>} : memref<8x32xbf16, #tpu.memory_space<vmem>>, vector<8x16xbf16>,
    return
  }
  func.func @transform_0(%arg0: i32, %arg1: i32, %arg2: i32) -> (i32, i32) {
    %c1_i32 = arith.constant 1 : i32
    %0 = arith.muli %arg0, %c1_i32 : i32
    %1 = arith.addi %0, %arg2 : i32
    %c0_i32 = arith.constant 0 : i32
    %2 = arith.addi %c0_i32, %arg1 : i32
    %c0_i32_0 = arith.constant 0 : i32
    return %1, %2 : i32, i32
  }
  func.func @transform_1(%arg0: i32, %arg1: i32, %arg2: i32) -> (i32, i32) {
    %c1_i32 = arith.constant 1 : i32
    %0 = arith.muli %arg0, %c1_i32 : i32
    %c0_i32 = arith.constant 0 : i32
    %1 = arith.addi %c0_i32, %arg1 : i32
    %c0_i32_0 = arith.constant 0 : i32
    return %0, %1 : i32, i32
  }
  func.func @transform_2(%arg0: i32, %arg1: i32, %arg2: i32) -> (i32, i32) {
    %c1_i32 = arith.constant 1 : i32
    %0 = arith.muli %arg0, %c1_i32 : i32
    %c0_i32 = arith.constant 0 : i32
    %1 = arith.addi %c0_i32, %arg1 : i32
    %c0_i32_0 = arith.constant 0 : i32
    return %0, %1 : i32, i32
  }
  func.func @transform_3(%arg0: i32, %arg1: i32, %arg2: i32) -> (i32, i32, i32) {
    %c0_i32 = arith.constant 0 : i32
    %c0_i32_0 = arith.constant 0 : i32
    %c0_i32_1 = arith.constant 0 : i32
    return %arg0, %c0_i32, %c0_i32_0 : i32, i32, i32
  }
  func.func @transform_4(%arg0: i32, %arg1: i32, %arg2: i32) -> (i32, i32) {
    %c1_i32 = arith.constant 1 : i32
    %0 = arith.muli %arg0, %c1_i32 : i32
    %1 = arith.addi %0, %arg2 : i32
    %c0_i32 = arith.constant 0 : i32
    return %1, %arg1 : i32, i32
  }
}

module attributes {stable_mosaic.version = 11 : i64} {
  func.func @_matmul_bias_act_kernel(%arg0: i32, %arg1: i32, %arg2: memref<16x32xbf16, #tpu.memory_space<vmem>>, %arg3: memref<32x64xbf16, #tpu.memory_space<vmem>>, %arg4: memref<1x64xf32, #tpu.memory_space<vmem>>, %arg5: memref<16x64xbf16, #tpu.memory_space<vmem>>) attributes {dimension_semantics = [#tpu.dimension_semantics<parallel>, #tpu.dimension_semantics<parallel>], iteration_bounds = array<i64: 1, 1>, scalar_prefetch = 0 : i64, scratch_operands = 0 : i64, tpu.core_type = #tpu.core_type<tc>, window_params = [{transform_indices = @transform_0, window_bounds = array<i64: 16, 32>}, {transform_indices = @transform_1, window_bounds = array<i64: 32, 64>}, {transform_indices = @transform_2, window_bounds = array<i64: 1, 64>}, {transform_indices = @transform_3, window_bounds = array<i64: 16, 64>}]} {
    %c0 = arith.constant 0 : index
    %c0_0 = arith.constant 0 : index
    %0 = vector.load %arg2[%c0, %c0_0] : memref<16x32xbf16, #tpu.memory_space<vmem>>, vector<16x32xbf16>
    %c0_1 = arith.constant 0 : index
    %c0_2 = arith.constant 0 : index
    %1 = vector.load %arg3[%c0_1, %c0_2] : memref<32x64xbf16, #tpu.memory_space<vmem>>, vector<32x64xbf16>
    %cst = arith.constant dense<0.000000e+00> : vector<16x64xf32>
    %2 = tpu.matmul %0, %1, %cst {dimension_numbers = #tpu.dot_dimension_numbers<[1], [0], [0], [1], [0, 0, 1, 1], [], []>} : vector<16x32xbf16>, vector<32x64xbf16>, vector<16x64xf32> -> vector<16x64xf32>
    %c0_3 = arith.constant 0 : index
    %c0_4 = arith.constant 0 : index
    %3 = vector.load %arg4[%c0_3, %c0_4] : memref<1x64xf32, #tpu.memory_space<vmem>>, vector<1x64xf32>
    %4 = vector.broadcast %3 : vector<1x64xf32> to vector<16x64xf32>
    %5 = arith.addf %2, %4 : vector<16x64xf32>
    %cst_5 = arith.constant 5.000000e-01 : f32
    %6 = vector.broadcast %cst_5 : f32 to vector<16x64xf32>
    %7 = arith.mulf %6, %5 : vector<16x64xf32>
    %cst_6 = arith.constant 4.471500e-02 : f32
    %8 = vector.broadcast %cst_6 : f32 to vector<16x64xf32>
    %9 = arith.mulf %8, %5 : vector<16x64xf32>
    %10 = arith.mulf %9, %5 : vector<16x64xf32>
    %11 = arith.mulf %10, %5 : vector<16x64xf32>
    %12 = arith.addf %5, %11 : vector<16x64xf32>
    %cst_7 = arith.constant 0.797884583 : f32
    %13 = vector.broadcast %cst_7 : f32 to vector<16x64xf32>
    %14 = arith.mulf %13, %12 : vector<16x64xf32>
    %15 = math.tanh %14 : vector<16x64xf32>
    %cst_8 = arith.constant 1.000000e+00 : f32
    %16 = vector.broadcast %cst_8 : f32 to vector<16x64xf32>
    %17 = arith.addf %16, %15 : vector<16x64xf32>
    %18 = arith.mulf %7, %17 : vector<16x64xf32>
    %19 = arith.truncf %18 : vector<16x64xf32> to vector<16x64xbf16>
    %c0_9 = arith.constant 0 : index
    %c0_10 = arith.constant 0 : index
    %20 = vector.load %arg5[%c0_9, %c0_10] : memref<16x64xbf16, #tpu.memory_space<vmem>>, vector<16x64xbf16>
    tpu.vector_store %arg5[%c0_9, %c0_10], %19 {strides = array<i32>} : memref<16x64xbf16, #tpu.memory_space<vmem>>, vector<16x64xbf16>,
    return
  }
  func.func @transform_0(%arg0: i32, %arg1: i32) -> (i32, i32) {
    %c0_i32 = arith.constant 0 : i32
    %c0_i32_0 = arith.constant 0 : i32
    return %arg1, %c0_i32 : i32, i32
  }
  func.func @transform_1(%arg0: i32, %arg1: i32) -> (i32, i32) {
    %c0_i32 = arith.constant 0 : i32
    %c0_i32_0 = arith.constant 0 : i32
    return %c0_i32, %arg0 : i32, i32
  }
  func.func @transform_2(%arg0: i32, %arg1: i32) -> (i32, i32) {
    %c0_i32 = arith.constant 0 : i32
    %c0_i32_0 = arith.constant 0 : i32
    return %c0_i32, %arg0 : i32, i32
  }
  func.func @transform_3(%arg0: i32, %arg1: i32) -> (i32, i32) {
    %c0_i32 = arith.constant 0 : i32
    return %arg1, %arg0 : i32, i32
  }
}

module attributes {stable_mosaic.version = 11 : i64} {
  func.func @_matmul_add_ln_kernel(%arg0: i32, %arg1: memref<16x64xbf16, #tpu.memory_space<vmem>>, %arg2: memref<64x32xbf16, #tpu.memory_space<vmem>>, %arg3: memref<1x32xf32, #tpu.memory_space<vmem>>, %arg4: memref<16x32xbf16, #tpu.memory_space<vmem>>, %arg5: memref<1x32xf32, #tpu.memory_space<vmem>>, %arg6: memref<1x32xf32, #tpu.memory_space<vmem>>, %arg7: memref<16x32xbf16, #tpu.memory_space<vmem>>) attributes {dimension_semantics = [#tpu.dimension_semantics<parallel>], iteration_bounds = array<i64: 1>, scalar_prefetch = 0 : i64, scratch_operands = 0 : i64, tpu.core_type = #tpu.core_type<tc>, window_params = [{transform_indices = @transform_0, window_bounds = array<i64: 16, 64>}, {pipeline_mode = #tpu.pipeline_mode<synchronous>, transform_indices = @transform_1, window_bounds = array<i64: 64, 32>}, {pipeline_mode = #tpu.pipeline_mode<synchronous>, transform_indices = @transform_2, window_bounds = array<i64: 1, 32>}, {transform_indices = @transform_3, window_bounds = array<i64: 16, 32>}, {pipeline_mode = #tpu.pipeline_mode<synchronous>, transform_indices = @transform_4, window_bounds = array<i64: 1, 32>}, {pipeline_mode = #tpu.pipeline_mode<synchronous>, transform_indices = @transform_5, window_bounds = array<i64: 1, 32>}, {transform_indices = @transform_6, window_bounds = array<i64: 16, 32>}]} {
    %c0 = arith.constant 0 : index
    %c0_0 = arith.constant 0 : index
    %0 = vector.load %arg1[%c0, %c0_0] : memref<16x64xbf16, #tpu.memory_space<vmem>>, vector<16x64xbf16>
    %c0_1 = arith.constant 0 : index
    %c0_2 = arith.constant 0 : index
    %1 = vector.load %arg2[%c0_1, %c0_2] : memref<64x32xbf16, #tpu.memory_space<vmem>>, vector<64x32xbf16>
    %cst = arith.constant dense<0.000000e+00> : vector<16x32xf32>
    %2 = tpu.matmul %0, %1, %cst {dimension_numbers = #tpu.dot_dimension_numbers<[1], [0], [0], [1], [0, 0, 1, 1], [], []>} : vector<16x64xbf16>, vector<64x32xbf16>, vector<16x32xf32> -> vector<16x32xf32>
    %c0_3 = arith.constant 0 : index
    %c0_4 = arith.constant 0 : index
    %3 = vector.load %arg3[%c0_3, %c0_4] : memref<1x32xf32, #tpu.memory_space<vmem>>, vector<1x32xf32>
    %4 = vector.broadcast %3 : vector<1x32xf32> to vector<16x32xf32>
    %5 = arith.addf %2, %4 : vector<16x32xf32>
    %c0_5 = arith.constant 0 : index
    %c0_6 = arith.constant 0 : index
    %6 = vector.load %arg4[%c0_5, %c0_6] : memref<16x32xbf16, #tpu.memory_space<vmem>>, vector<16x32xbf16>
    %7 = arith.extf %6 : vector<16x32xbf16> to vector<16x32xf32>
    %8 = arith.addf %5, %7 : vector<16x32xf32>
    %cst_7 = arith.constant dense<0.000000e+00> : vector<16xf32>
    %9 = vector.multi_reduction <add>, %8, %cst_7 [1] : vector<16x32xf32> to vector<16xf32>
    %10 = vector.shape_cast %9 : vector<16xf32> to vector<16x1xf32>
    %cst_8 = arith.constant 3.200000e+01 : f32
    %11 = vector.broadcast %cst_8 : f32 to vector<16x1xf32>
    %12 = arith.divf %10, %11 : vector<16x1xf32>
    %13 = vector.broadcast %12 : vector<16x1xf32> to vector<16x32xf32>
    %14 = arith.subf %8, %13 : vector<16x32xf32>
    %15 = arith.mulf %14, %14 : vector<16x32xf32>
    %cst_9 = arith.constant dense<0.000000e+00> : vector<16xf32>
    %16 = vector.multi_reduction <add>, %15, %cst_9 [1] : vector<16x32xf32> to vector<16xf32>
    %17 = vector.shape_cast %16 : vector<16xf32> to vector<16x1xf32>
    %cst_10 = arith.constant 3.200000e+01 : f32
    %18 = vector.broadcast %cst_10 : f32 to vector<16x1xf32>
    %19 = arith.divf %17, %18 : vector<16x1xf32>
    %cst_11 = arith.constant 9.99999996E-13 : f32
    %20 = vector.broadcast %cst_11 : f32 to vector<16x1xf32>
    %21 = arith.addf %19, %20 : vector<16x1xf32>
    %22 = math.rsqrt %21 : vector<16x1xf32>
    %23 = vector.broadcast %22 : vector<16x1xf32> to vector<16x32xf32>
    %24 = arith.mulf %14, %23 : vector<16x32xf32>
    %c0_12 = arith.constant 0 : index
    %c0_13 = arith.constant 0 : index
    %25 = vector.load %arg5[%c0_12, %c0_13] : memref<1x32xf32, #tpu.memory_space<vmem>>, vector<1x32xf32>
    %26 = vector.broadcast %25 : vector<1x32xf32> to vector<16x32xf32>
    %27 = arith.mulf %24, %26 : vector<16x32xf32>
    %c0_14 = arith.constant 0 : index
    %c0_15 = arith.constant 0 : index
    %28 = vector.load %arg6[%c0_14, %c0_15] : memref<1x32xf32, #tpu.memory_space<vmem>>, vector<1x32xf32>
    %29 = vector.broadcast %28 : vector<1x32xf32> to vector<16x32xf32>
    %30 = arith.addf %27, %29 : vector<16x32xf32>
    %31 = arith.truncf %30 : vector<16x32xf32> to vector<16x32xbf16>
    %c0_16 = arith.constant 0 : index
    %c0_17 = arith.constant 0 : index
    %32 = vector.load %arg7[%c0_16, %c0_17] : memref<16x32xbf16, #tpu.memory_space<vmem>>, vector<16x32xbf16>
    tpu.vector_store %arg7[%c0_16, %c0_17], %31 {strides = array<i32>} : memref<16x32xbf16, #tpu.memory_space<vmem>>, vector<16x32xbf16>,
    return
  }
  func.func @transform_0(%arg0: i32) -> (i32, i32) {
    %c0_i32 = arith.constant 0 : i32
    %c0_i32_0 = arith.constant 0 : i32
    return %arg0, %c0_i32 : i32, i32
  }
  func.func @transform_1(%arg0: i32) -> (i32, i32) {
    %c0_i32 = arith.constant 0 : i32
    %c0_i32_0 = arith.constant 0 : i32
    %c0_i32_1 = arith.constant 0 : i32
    return %c0_i32, %c0_i32_0 : i32, i32
  }
  func.func @transform_2(%arg0: i32) -> (i32, i32) {
    %c0_i32 = arith.constant 0 : i32
    %c0_i32_0 = arith.constant 0 : i32
    %c0_i32_1 = arith.constant 0 : i32
    return %c0_i32, %c0_i32_0 : i32, i32
  }
  func.func @transform_3(%arg0: i32) -> (i32, i32) {
    %c0_i32 = arith.constant 0 : i32
    %c0_i32_0 = arith.constant 0 : i32
    return %arg0, %c0_i32 : i32, i32
  }
  func.func @transform_4(%arg0: i32) -> (i32, i32) {
    %c0_i32 = arith.constant 0 : i32
    %c0_i32_0 = arith.constant 0 : i32
    %c0_i32_1 = arith.constant 0 : i32
    return %c0_i32, %c0_i32_0 : i32, i32
  }
  func.func @transform_5(%arg0: i32) -> (i32, i32) {
    %c0_i32 = arith.constant 0 : i32
    %c0_i32_0 = arith.constant 0 : i32
    %c0_i32_1 = arith.constant 0 : i32
    return %c0_i32, %c0_i32_0 : i32, i32
  }
  func.func @transform_6(%arg0: i32) -> (i32, i32) {
    %c0_i32 = arith.constant 0 : i32
    %c0_i32_0 = arith.constant 0 : i32
    return %arg0, %c0_i32 : i32, i32
  }
}

module attributes {stable_mosaic.version = 11 : i64} {
  func.func @_pooler_head_kernel(%arg0: memref<2x32xbf16, #tpu.memory_space<vmem>>, %arg1: memref<32x32xbf16, #tpu.memory_space<vmem>>, %arg2: memref<1x32xf32, #tpu.memory_space<vmem>>, %arg3: memref<1x32xf32, #tpu.memory_space<vmem>>, %arg4: memref<1x1xf32, #tpu.memory_space<vmem>>, %arg5: memref<2x1xf32, #tpu.memory_space<vmem>>) attributes {dimension_semantics = [], scalar_prefetch = 0 : i64, scratch_operands = 0 : i64, tpu.core_type = #tpu.core_type<tc>} {
    %c0 = arith.constant 0 : index
    %c0_0 = arith.constant 0 : index
    %0 = vector.load %arg0[%c0, %c0_0] : memref<2x32xbf16, #tpu.memory_space<vmem>>, vector<2x32xbf16>
    %c0_1 = arith.constant 0 : index
    %c0_2 = arith.constant 0 : index
    %1 = vector.load %arg1[%c0_1, %c0_2] : memref<32x32xbf16, #tpu.memory_space<vmem>>, vector<32x32xbf16>
    %cst = arith.constant dense<0.000000e+00> : vector<2x32xf32>
    %2 = tpu.matmul %0, %1, %cst {dimension_numbers = #tpu.dot_dimension_numbers<[1], [0], [0], [1], [0, 0, 1, 1], [], []>} : vector<2x32xbf16>, vector<32x32xbf16>, vector<2x32xf32> -> vector<2x32xf32>
    %c0_3 = arith.constant 0 : index
    %c0_4 = arith.constant 0 : index
    %3 = vector.load %arg2[%c0_3, %c0_4] : memref<1x32xf32, #tpu.memory_space<vmem>>, vector<1x32xf32>
    %4 = vector.broadcast %3 : vector<1x32xf32> to vector<2x32xf32>
    %5 = arith.addf %2, %4 : vector<2x32xf32>
    %6 = math.tanh %5 : vector<2x32xf32>
    %c0_5 = arith.constant 0 : index
    %c0_6 = arith.constant 0 : index
    %7 = vector.load %arg3[%c0_5, %c0_6] : memref<1x32xf32, #tpu.memory_space<vmem>>, vector<1x32xf32>
    %8 = vector.broadcast %7 : vector<1x32xf32> to vector<2x32xf32>
    %9 = arith.mulf %6, %8 : vector<2x32xf32>
    %cst_7 = arith.constant dense<0.000000e+00> : vector<2xf32>
    %10 = vector.multi_reduction <add>, %9, %cst_7 [1] : vector<2x32xf32> to vector<2xf32>
    %11 = vector.shape_cast %10 : vector<2xf32> to vector<2x1xf32>
    %c0_8 = arith.constant 0 : index
    %c0_9 = arith.constant 0 : index
    %12 = vector.load %arg4[%c0_8, %c0_9] : memref<1x1xf32, #tpu.memory_space<vmem>>, vector<1x1xf32>
    %13 = vector.broadcast %12 : vector<1x1xf32> to vector<2x1xf32>
    %14 = arith.addf %11, %13 : vector<2x1xf32>
    %c0_10 = arith.constant 0 : index
    %c0_11 = arith.constant 0 : index
    %15 = vector.load %arg5[%c0_10, %c0_11] : memref<2x1xf32, #tpu.memory_space<vmem>>, vector<2x1xf32>
    tpu.vector_store %arg5[%c0_10, %c0_11], %14 {strides = array<i32>} : memref<2x1xf32, #tpu.memory_space<vmem>>, vector<2x1xf32>,
    return
  }
}

</mosaic_0001>

<bundles_post_ra>
// kernel: bleurt_forward.15
= control target key start
LH: loop header
LB: loop body
LE: loop exit
PB: predicated region body
PF: predicated region fallthrough
CT: control target
= control target key end

     0   :  { %v200_v0 = vmov 0.0   ;;  %vm201_vm0 = vmmov 0   ;;  %vm54_vm1 = vcmask 261120   ;;  %vm158_vm2 = vcmask 257024   ;;  %s269_s1 = inlined_call_operand.vmem [shape: bf16[32,32], index: 1, kind: input, shape index: {}]   ;;  %s270_s0 = inlined_call_operand.vmem [shape: bf16[16,32], index: 0, kind: input, shape index: {}]   ;;  %s271_s3 = inlined_call_operand.vmem [shape: bf16[16,32], index: 3, kind: input, shape index: {}]   ;;  %s272_s2 = inlined_call_operand.vmem [shape: f32[1,32], index: 2, kind: input, shape index: {}]   ;;  %s273_s4 = inlined_call_operand.vmem [shape: f32[1,32], index: 4, kind: input, shape index: {}]   ;;  %s274_s5 = inlined_call_operand.vmem [shape: f32[1,32], index: 5, kind: input, shape index: {}]   ;;  %s275_s6 = inlined_call_operand.vmem [shape: bf16[16,32], index: 6, kind: output, shape index: {}]  }
   0x1   :  { %183 = vmatprep.subr.bf16.mxu0 %v200_v0  ;;  %v193_v1 = vld [vmem:[%s269_s1 + $0x8] sm:$0xff]   ;;  %187 = vmatprep.mubr.msk.bf16.mxu0 %vm201_vm0, %v200_v0  ;;  %v194_v2 = vld [vmem:[%s269_s1] sm:$0xff]  }
   0x2   :  { %184 = vmatpush3.bf16.msra.mxu0 %v193_v1  ;;  %v195_v3 = vld [vmem:[%s270_s0] sm:$0xff]  }
   0x3   :  { %185 = vmatprep.subr.bf16.mxu0 %v200_v0  ;;  %v177_v4 = vld [vmem:[%s271_s3] sm:$0xff]  }
   0x4   :  { %v165_v5 = vld [vmem:[%s272_s2] ss:$0 sm:$0xff]  ;;  %v178_v6 = vunpack.c.l.bf16 %v177_v4  ;;  %v179_v11 = vunpack.c.h.bf16 %v177_v4 }
   0x5   :  { %v170_v35 = vld [vmem:[%s273_s4] ss:$0 sm:$0xff] }
   0x6   :  { %186 = vmatpush3.bf16.msra.mxu0 %v194_v2  ;;  %v171_v37 = vld [vmem:[%s274_s5] ss:$0 sm:$0xff] }
   0x9   :  { %188 = vmatmul.mubr.msk.bf16.vlgmr.msra.gmra.mxu0 %vm54_vm1, %v195_v3 }
  0xc9   :  { %v92_v7 = vpop.f32.mrf.mxu0 }
  0xca   :  { %v93_v8 = vadd.f32 %v165_v5, %v92_v7 }
  0xcb   :  { %v189_v9 = vpop.f32.mrf.mxu0 }
  0xcc   :  { %v103_v10 = vadd.f32 %v178_v6, %v93_v8 }
  0xcd   :  { %v95_v12 = vpop.f32.mrf.mxu0 }
  0xce   :  { %v96_v13 = vadd.f32 %v165_v5, %v95_v12  ;;  %v105_v14 = vsel %vm54_vm1, %v103_v10, 0.0 }
  0xcf   :  { %106 = vadd.xlane.f32.xlu0 %v105_v14  ;;  %v190_v15 = vpop.f32.mrf.mxu0 }
  0xd0   :  { %v104_v16 = vadd.f32 %v179_v11, %v96_v13 }
  0xd2   :  { %v108_v17 = vsel %vm54_vm1, %v104_v16, 0.0 }
  0xd3   :  { %109 = vadd.xlane.f32.xlu0 %v108_v17 }
 0x158   :  { %v107_v18 = vpop.xlane.xlu0 %106 }
 0x159   :  { %v112_v19 = vmul.f32 0.03125, %v107_v18 }
 0x15b   :  { %v114_v20 = vsub.f32 %v103_v10, %v112_v19 }
 0x15c   :  { %v110_v21 = vpop.xlane.xlu0 %109 }
 0x15d   :  { %v113_v22 = vmul.f32 0.03125, %v110_v21  ;;  %v116_v23 = vmul.f32 %v114_v20, %v114_v20 }
 0x15f   :  { %v115_v24 = vsub.f32 %v104_v16, %v113_v22  ;;  %v118_v25 = vsel %vm54_vm1, %v116_v23, 0.0 }
 0x160   :  { %119 = vadd.xlane.f32.xlu1 %v118_v25 }
 0x161   :  { %v117_v26 = vmul.f32 %v115_v24, %v115_v24 }
 0x163   :  { %v121_v27 = vsel %vm54_vm1, %v117_v26, 0.0 }
 0x164   :  { %122 = vadd.xlane.f32.xlu1 %v121_v27 }
 0x1e9   :  { %v120_v28 = vpop.xlane.xlu1 %119 }
 0x1ea   :  { %v124_v29 = vmul.f32 0.03125, %v120_v28 }
 0x1ec   :  { %v126_v30 = vadd.f32 1e-12, %v124_v29 }
 0x1ed   :  { %v123_v31 = vpop.xlane.xlu1 %122 }
 0x1ee   :  { %196 = vrsqrt.f32 %v126_v30  ;;  %v125_v32 = vmul.f32 0.03125, %v123_v31 }
 0x1f0   :  { %v127_v33 = vadd.f32 1e-12, %v125_v32 }
 0x1f2   :  { %198 = vrsqrt.f32 %v127_v33 }
 0x1fb   :  { %v197_v34 = vpop.eup %196 }
 0x1fc   :  { %v130_v36 = vmul.f32 %v197_v34, %v114_v20 }
 0x1fe   :  { %v139_v38 = vmul.f32 %v170_v35, %v130_v36 }
 0x1ff   :  { %v199_v39 = vpop.eup %198 }
 0x200   :  { %v148_v40 = vadd.f32 %v171_v37, %v139_v38  ;;  %v131_v41 = vmul.f32 %v199_v39, %v115_v24 }
 0x202   :  { %v174_v42 = vpack.c.bf16 %v148_v40, %v148_v40  ;;  %v140_v43 = vmul.f32 %v170_v35, %v131_v41 }
 0x204   :  { %159 = vst.msk [vmem:[%s275_s6] sm:$0xf] %vm158_vm2, %v174_v42  ;;  %v149_v44 = vadd.f32 %v171_v37, %v140_v43 }
 0x206   :  { %v175_v45 = vpack.c.bf16 %v149_v44, %v149_v44 }
 0x208   :  { %160 = vst.msk [vmem:[%s275_s6 + $0x4] sm:$0xf] %vm158_vm2, %v175_v45 }

// kernel: bleurt_forward.12
= control target key start
LH: loop header
LB: loop body
LE: loop exit
PB: predicated region body
PF: predicated region fallthrough
CT: control target
= control target key end

     0   :  { %s533_s18 = smov 0   ;;  %s535_s19 = smov 0   ;;  %s582_s0 = inlined_call_operand.vmem [shape: f32[2,8,32], index: 0, kind: input, shape index: {}]   ;;  %s583_s1 = inlined_call_operand.vmem [shape: f32[2,8,32], index: 1, kind: input, shape index: {}]   ;;  %s584_s2 = inlined_call_operand.vmem [shape: f32[1,8,32], index: 2, kind: input, shape index: {}]   ;;  %s585_s3 = inlined_call_operand.vmem [shape: f32[1,32], index: 3, kind: input, shape index: {}]   ;;  %s586_s4 = inlined_call_operand.vmem [shape: f32[1,32], index: 4, kind: input, shape index: {}]   ;;  %s587_s5 = inlined_call_operand.vmem [shape: bf16[2,8,32], index: 5, kind: output, shape index: {}]  }
   0x1   :  { %s537_s20 = smov 0  }
   0x2 LB: > { %s27_s21 = sadd.s32 1, %s497_s19  ;;  %p445_p0 = scmp.ge.s32.totalorder %s501_s20, 1  ;;  %s501_s20 = sphi %s537_s20, %s15_s20   ;;  %s497_s19 = sphi %s535_s19, %s589_s19   ;;  %s493_s18 = sphi %s533_s18, %s588_s18  }
   0x3   : > { %p29_p1 = scmp.ge.s32.totalorder %s27_s21, 2  ;;  %p228_p2 = scmp.lt.s32.totalorder %s501_s20, 3 }
   0x5   : > { %s591_s21 = smov (%p29_p1, %s27_s21), 0  ;;  %p229_p3 = pnand %p445_p0, %p228_p2 }
   0x6   : > { %p271_p4 = scmp.lt.s32.totalorder (!%p229_p3), %s493_s18, 1 }
   0x7   : > { %232 = sbr.rel (%p229_p3) target bundleno = 332 (0x14c), region = 40 }
   0xc   : > { %s593_s18 = smov (!%p271_p4, %s493_s18), 1  ;;  %v299_v2 = vld [vmem:[%s584_s2] sm:$0xff]  ;;  %vm301_vm0 = vcmask 261120   ;;  %vm333_vm1 = vcmask 257024  }
   0xd   : > { %s446_s22 = sshll.u32 %s593_s18, 3  ;;  %v449_v15 = vld [vmem:[%s585_s3] ss:$0 sm:$0xff]  ;;  %s448_s10 = sshll.u32 %s593_s18, 2 }
   0xe   : > { %s277_s25 = scalar_lea.vmem %s582_s0, %s446_s22  ;;  %s284_s28 = scalar_lea.vmem %s583_s1, %s446_s22  ;;  %v450_v17 = vld [vmem:[%s586_s4] ss:$0 sm:$0xff] }
   0xf   : > { %v296_v0 = vld [vmem:[%s277_s25] sm:$0xff]  ;;  %s295_s13 = scalar_lea.vmem %s587_s5, %s448_s10 }
  0x10   : > { %v297_v1 = vld [vmem:[%s284_s28] sm:$0xff] }
  0x11   : > { %v298_v3 = vadd.f32 %v297_v1, %v296_v0 }
  0x13   : > { %v300_v4 = vadd.f32 %v299_v2, %v298_v3 }
  0x15   : > { %v302_v5 = vsel %vm301_vm0, %v300_v4, 0.0 }
  0x16   : > { %303 = vadd.xlane.f32.xlu0 %v302_v5 }
  0x9f   : > { %v304_v6 = vpop.xlane.xlu0 %303 }
  0xa0   : > { %v306_v7 = vmul.f32 0.03125, %v304_v6 }
  0xa2   : > { %v307_v8 = vsub.f32 %v300_v4, %v306_v7 }
  0xa4   : > { %v308_v9 = vmul.f32 %v307_v8, %v307_v8 }
  0xa6   : > { %v309_v10 = vsel %vm301_vm0, %v308_v9, 0.0 }
  0xa7   : > { %310 = vadd.xlane.f32.xlu0 %v309_v10 }
 0x130   : > { %v311_v11 = vpop.xlane.xlu0 %310 }
 0x131   : > { %v312_v12 = vmul.f32 0.03125, %v311_v11 }
 0x133   : > { %v313_v13 = vadd.f32 1e-12, %v312_v12 }
 0x135   : > { %477 = vrsqrt.f32 %v313_v13 }
 0x142   : > { %v478_v14 = vpop.eup %477 }
 0x143   : > { %v315_v16 = vmul.f32 %v478_v14, %v307_v8 }
 0x145   : > { %v323_v18 = vmul.f32 %v449_v15, %v315_v16 }
 0x147   : > { %v331_v19 = vadd.f32 %v450_v17, %v323_v18 }
 0x149   : > { %v332_v20 = vpack.c.bf16 %v331_v19, %v331_v19 }
 0x14b   : > { %334 = vst.msk [vmem:[%s295_s13] sm:$0xf] %vm333_vm1, %v332_v20 }
 0x14c PF: > { %s15_s20 = sadd.s32 1, %s501_s20   ;;  %s588_s18 = smov %s497_s19 }
 0x14d   : > { %p12_p5 = scmp.ge.s32.totalorder %s15_s20, 4   ;;  %s589_s19 = smov %s591_s21 }
 0x14f   :  { %14 = sbr.rel (!%p12_p5) target bundleno = 2 (0x2), region = 76 }

// kernel: bleurt_forward.13
= control target key start
LH: loop header
LB: loop body
LE: loop exit
PB: predicated region body
PF: predicated region fallthrough
CT: control target
= control target key end

     0   :  { %v130_v0 = vmov 0.0   ;;  %vm131_vm0 = vmmov 0   ;;  %vm45_vm1 = vcmask 261120   ;;  %vm98_vm2 = vcmask 781312   ;;  %s170_s1 = inlined_call_operand.vmem [shape: bf16[32,96], index: 1, kind: input, shape index: {}]   ;;  %s171_s0 = inlined_call_operand.vmem [shape: bf16[16,32], index: 0, kind: input, shape index: {}]   ;;  %s172_s2 = inlined_call_operand.vmem [shape: f32[1,96], index: 2, kind: input, shape index: {}]   ;;  %s173_s3 = inlined_call_operand.vmem [shape: bf16[16,96], index: 3, kind: output, shape index: {}]  }
   0x1   :  { %117 = vmatprep.subr.bf16.mxu0 %v130_v0  ;;  %v127_v1 = vld [vmem:[%s170_s1 + $0x8] sm:$0xff]   ;;  %121 = vmatprep.mubr.msk.bf16.mxu0 %vm131_vm0, %v130_v0  ;;  %v128_v2 = vld [vmem:[%s170_s1] sm:$0xff]  }
   0x2   :  { %118 = vmatpush3.bf16.msra.mxu0 %v127_v1  ;;  %v129_v3 = vld [vmem:[%s171_s0] sm:$0xff]  }
   0x3   :  { %119 = vmatprep.subr.bf16.mxu0 %v130_v0  ;;  %v105_v4 = vld [vmem:[%s172_s2] ss:$0 sm:$0xff] }
   0x6   :  { %120 = vmatpush3.bf16.msra.mxu0 %v128_v2 }
   0x9   :  { %122 = vmatmul.mubr.msk.bf16.vlgmr.msra.gmra.mxu0 %vm45_vm1, %v129_v3 }
  0xc9   :  { %v83_v5 = vpop.f32.mrf.mxu0 }
  0xca   :  { %v84_v6 = vadd.f32 %v105_v4, %v83_v5 }
  0xcb   :  { %v123_v7 = vpop.f32.mrf.mxu0 }
  0xcc   :  { %v112_v8 = vpack.c.bf16 %v84_v6, %v84_v6 }
  0xcd   :  { %v86_v9 = vpop.f32.mrf.mxu0 }
  0xce   :  { %99 = vst.msk [vmem:[%s173_s3] sm:$0xf] %vm98_vm2, %v112_v8  ;;  %v87_v10 = vadd.f32 %v105_v4, %v86_v9 }
  0xcf   :  { %v124_v11 = vpop.f32.mrf.mxu0 }
  0xd0   :  { %v113_v12 = vpack.c.bf16 %v87_v10, %v87_v10 }
  0xd2   :  { %100 = vst.msk [vmem:[%s173_s3 + $0x4] sm:$0xf] %vm98_vm2, %v113_v12 }

// kernel: bleurt_forward.14
= control target key start
LH: loop header
LB: loop body
LE: loop exit
PB: predicated region body
PF: predicated region fallthrough
CT: control target
= control target key end

     0   :  { %s852_s15 = smov 0   ;;  %s854_s16 = smov 0   ;;  %s920_s0 = inlined_call_operand.vmem [shape: bf16[16,96], index: 0, kind: input, shape index: {}, may-alias: {0,1,2}]   ;;  %s921_s1 = inlined_call_operand.vmem [shape: bf16[16,96], index: 1, kind: input, shape index: {}, may-alias: {0,1,2}]   ;;  %s922_s2 = inlined_call_operand.vmem [shape: bf16[16,96], index: 2, kind: input, shape index: {}, may-alias: {0,1,2}]   ;;  %s923_s3 = inlined_call_operand.vmem [shape: f32[2,1,8], index: 3, kind: input, shape index: {}]   ;;  %s924_s4 = inlined_call_operand.vmem [shape: bf16[16,32], index: 4, kind: output, shape index: {}]  }
   0x1   :  { %s856_s17 = smov 0  }
   0x2 LB: > { %s33_s18 = sadd.s32 1, %s813_s16  ;;  %p699_p0 = scmp.ge.s32.totalorder %s817_s17, 1  ;;  %s817_s17 = sphi %s856_s17, %s14_s17   ;;  %s813_s16 = sphi %s854_s16, %s926_s16   ;;  %s809_s15 = sphi %s852_s15, %s925_s15  }
   0x3   : > { %p35_p1 = scmp.ge.s32.totalorder %s33_s18, 2  ;;  %p229_p2 = scmp.lt.s32.totalorder %s817_s17, 3 }
   0x5   : > { %s928_s18 = smov (%p35_p1, %s33_s18), 0  ;;  %p230_p3 = pnand %p699_p0, %p229_p2 }
   0x6   : > { %p279_p4 = scmp.lt.s32.totalorder (!%p230_p3), %s809_s15, 1  ;;  %s821_s26 = smov (!%p230_p3), 96  }
   0x7   : > { %233 = sbr.rel (%p230_p3) target bundleno = 1168 (0x490), region = 36  ;;  %s822_s30 = smov (!%p230_p3), 64  }
   0x8   : > { %s823_s5 = smov (!%p230_p3), 80   ;;  %s824_s6 = smov (!%p230_p3), 112  }
   0x9   : > { %s825_s10 = smov (!%p230_p3), 48   ;;  %s826_s14 = smov (!%p230_p3), 16  }
   0xc   : > { %v819_v0 = vmov 0.0   ;;  %vm820_vm0 = vmmov 0   ;;  %s930_s15 = smov (!%p279_p4, %s809_s15), 1  ;;  %vm329_vm1 = vcmask 130048   ;;  %vm376_vm2 = vcmask 64512  }
   0xd   : > { %726 = vmatprep.subr.bf16.mxu0 %v819_v0  ;;  %728 = vmatprep.mubr.msk.bf16.mxu0 %vm820_vm0, %v819_v0  ;;  %s872_s19 = sshll.u32 %s930_s15, 2  ;;  %s303_s9 = scalar_lea.vmem %s923_s3, %s930_s15  ;;  %vm392_vm3 = vcmask 1043456   ;;  %vm442_vm4 = vcmask 125952   ;;  %vm573_vm5 = vcmask 257152  }
   0xe   : > { %732 = vmatprep.subr.bf16.mxu1 %v819_v0  ;;  %734 = vmatprep.mubr.msk.bf16.mxu1 %vm820_vm0, %v819_v0  ;;  %s293_s22 = scalar_lea.vmem %s921_s1, %s872_s19  ;;  %s285_s25 = scalar_lea.vmem %s920_s0, %s872_s19  ;;  %v704_v8 = vld [vmem:[%s303_s9] ss:$0 sm:$0xff] }
   0xf   : > { %v782_v1 = vld [vmem:[%s293_s22] ss:$0 sps:$4 sm:$0xff]   ;;  %s889_s29 = scalar_lea.vmem %s922_s2, %s872_s19  ;;  %s311_s13 = scalar_lea.vmem %s924_s4, %s872_s19 }
  0x10   : > { %327 = vrot.lane.b32.xlu0 %v782_v1, %s821_s26  ;;  %v315_v4 = vld [vmem:[%s285_s25] sm:$0xf] }
  0x11   : > { %v783_v5 = vld [vmem:[%s889_s29] ss:$0 sps:$4 sm:$0xff]  }
  0x12   : > { %387 = vrot.lane.b32.xlu1 %v783_v5, %s822_s30  ;;  %v784_v6 = vld [vmem:[%s293_s22] ss:$0 sps:$4 sm:$0xff]  }
  0x13   : > { %v785_v7 = vld [vmem:[%s285_s25] ss:$0 sps:$4 sm:$0xff]  }
  0x14   : > { %v786_v25 = vld [vmem:[%s889_s29] ss:$0 sps:$4 sm:$0xff]  }
  0x16   : > { %455 = vrot.lane.b32.xlu1 %v784_v6, %s823_s5 }
  0x1a   : > { %450 = vrot.lane.b32.xlu1 %v785_v7, %s824_s6 }
  0x82   : > { %v328_v2 = vpop.permute.xlu0 %327 }
  0x83   : > { %v334_v3 = vsel %vm329_vm1, %v328_v2, 0 }
  0x84   : > { %727 = vmatpush3.bf16.xpose.msra.mxu0 %v334_v3  ;;  %v388_v15 = vpop.permute.xlu1 %387 }
  0x85   : > { %744 = vmatprep.subr.bf16.mxu0 %v819_v0  ;;  %v394_v16 = vsel %vm392_vm3, %v388_v15, 0 }
  0x86   : > { %733 = vmatpush3.bf16.msra.mxu1 %v394_v16 }
  0x87   : > { %738 = vmatprep.subr.bf16.mxu1 %v819_v0 }
  0x88   : > { %v456_v20 = vpop.permute.xlu1 %455 }
  0x89   : > { %v461_v22 = vsel %vm329_vm1, %v456_v20, 0 }
  0x8b   : > { %729 = vmatmul.mubr.msk.bf16.vlgmr.msra.gmra.mxu0 %vm329_vm1, %v315_v4 }
  0x8c   : > { %746 = vmatprep.mubr.msk.bf16.mxu0 %vm820_vm0, %v819_v0  ;;  %v451_v24 = vpop.permute.xlu1 %450 }
 0x14b   : > { %v370_v9 = vpop.f32.mrf.mxu0 }
 0x14c   : > { %v371_v10 = vadd.f32 %v704_v8, %v370_v9 }
 0x14d   : > { %v730_v11 = vpop.f32.mrf.mxu0 }
 0x14e   : > { %v377_v12 = vsel %vm376_vm2, %v371_v10, -inf }
 0x14f   : > { %378 = vmax.xlane.f32.xlu0 %v377_v12  ;;  %v373_v13 = vpop.f32.mrf.mxu0 }
 0x151   : > { %v731_v14 = vpop.f32.mrf.mxu0 }
 0x165   : > { %513 = vrot.lane.b32.xlu0 %v786_v25, %s825_s10 }
 0x1d8   : > { %v379_v17 = vpop.xlane.xlu0 %378 }
 0x1d9   : > { %v380_v18 = vsub.f32 %v371_v10, %v379_v17 }
 0x1db   : > { %v381_v19 = vmul.f32 1.442695, %v380_v18 }
 0x1dc   : > { %v514_v36 = vpop.permute.xlu0 %513 }
 0x1dd   : > { %787 = vpow2.f32 %v381_v19  ;;  %v519_v37 = vsel %vm392_vm3, %v514_v36, 0 }
 0x1de   : > { %745 = vmatpush3.bf16.msra.mxu0 %v519_v37 }
 0x1ea   : > { %v788_v21 = vpop.eup %787 }
 0x1eb   : > { %v383_v23 = vpack.c.bf16 %v788_v21, %v788_v21  ;;  %v436_v44 = vsel %vm376_vm2, %v788_v21, 0.0 }
 0x1ed   : > { %735 = vmatmul.mubr.msk.bf16.vlgmr.msra.gmra.mxu1 %vm376_vm2, %v383_v23 }
 0x1ee   : > { %739 = vmatpush3.bf16.xpose.msra.mxu1 %v461_v22  ;;  %740 = vmatprep.mubr.msk.bf16.mxu1 %vm820_vm0, %v819_v0 }
 0x1f5   : > { %741 = vmatmul.mubr.msk.bf16.vlgmr.msra.gmra.mxu1 %vm329_vm1, %v451_v24 }
 0x2ad   : > { %v430_v26 = vpop.f32.mrf.mxu1 }
 0x2af   : > { %v736_v27 = vpop.f32.mrf.mxu1 }
 0x2b1   : > { %v433_v28 = vpop.f32.mrf.mxu1 }
 0x2b3   : > { %v737_v29 = vpop.f32.mrf.mxu1 }
 0x2b5   : > { %v497_v30 = vpop.f32.mrf.mxu1 }
 0x2b6   : > { %v498_v31 = vadd.f32 %v704_v8, %v497_v30 }
 0x2b7   : > { %v742_v32 = vpop.f32.mrf.mxu1 }
 0x2b8   : > { %v503_v33 = vsel %vm376_vm2, %v498_v31, -inf }
 0x2b9   : > { %504 = vmax.xlane.f32.xlu1 %v503_v33  ;;  %v500_v34 = vpop.f32.mrf.mxu1 }
 0x2bb   : > { %v743_v35 = vpop.f32.mrf.mxu1 }
 0x342   : > { %v505_v38 = vpop.xlane.xlu1 %504 }
 0x343   : > { %v506_v39 = vsub.f32 %v498_v31, %v505_v38 }
 0x345   : > { %v507_v40 = vmul.f32 1.442695, %v506_v39 }
 0x347   : > { %789 = vpow2.f32 %v507_v40 }
 0x354   : > { %v790_v41 = vpop.eup %789 }
 0x355   : > { %v561_v42 = vsel %vm376_vm2, %v790_v41, 0.0  ;;  %v509_v43 = vpack.c.bf16 %v790_v41, %v790_v41 }
 0x356   : > { %562 = vadd.xlane.f32.xlu1 %v561_v42 }
 0x357   : > { %747 = vmatmul.mubr.msk.bf16.vlgmr.msra.gmra.mxu0 %vm376_vm2, %v509_v43 }
 0x35a   : > { %437 = vadd.xlane.f32.xlu1 %v436_v44 }
 0x3df   : > { %v563_v45 = vpop.xlane.xlu1 %562 }
 0x3e3   : > { %v438_v46 = vpop.xlane.xlu1 %437 }
 0x3e4   : > { %791 = vrcp.f32 %v438_v46 }
 0x3e5   : > { %793 = vrcp.f32 %v563_v45 }
 0x3f1   : > { %v792_v47 = vpop.eup %791 }
 0x3f2   : > { %v440_v48 = vmul.f32 %v792_v47, %v430_v26  ;;  %v794_v50 = vpop.eup %793 }
 0x3f4   : > { %v441_v49 = vpack.c.bf16 %v440_v48, %v440_v48 }
 0x3f6   : > { %443 = vst.msk [vmem:[%s311_s13] sm:$0xf] %vm442_vm4, %v441_v49 }
 0x417   : > { %v555_v51 = vpop.f32.mrf.mxu0 }
 0x418   : > { %v565_v52 = vmul.f32 %v794_v50, %v555_v51 }
 0x419   : > { %v748_v53 = vpop.f32.mrf.mxu0 }
 0x41a   : > { %v717_v54 = vpack.c.bf16 %v565_v52, %v565_v52 }
 0x41b   : > { %v558_v55 = vpop.f32.mrf.mxu0 }
 0x41c   : > { %570 = vrot.lane.b32.xlu1 %v717_v54, %s826_s14 }
 0x41d   : > { %v749_v56 = vpop.f32.mrf.mxu0 }
 0x48e   : > { %v571_v57 = vpop.permute.xlu1 %570 }
 0x48f   : > { %574 = vst.msk [vmem:[%s311_s13] sm:$0xf] %vm573_vm5, %v571_v57 }
 0x490 PF: > { %s14_s17 = sadd.s32 1, %s817_s17   ;;  %s925_s15 = smov %s813_s16 }
 0x491   : > { %p11_p5 = scmp.ge.s32.totalorder %s14_s17, 4   ;;  %s926_s16 = smov %s928_s18 }
 0x493   :  { %13 = sbr.rel (!%p11_p5) target bundleno = 2 (0x2), region = 75 }

// kernel: bleurt_forward.16
= control target key start
LH: loop header
LB: loop body
LE: loop exit
PB: predicated region body
PF: predicated region fallthrough
CT: control target
= control target key end

     0   :  { %v152_v0 = vmov 0.0   ;;  %vm153_vm0 = vmmov 0   ;;  %vm45_vm1 = vcmask 261120   ;;  %vm116_vm2 = vcmask 519168   ;;  %s192_s1 = inlined_call_operand.vmem [shape: bf16[32,64], index: 1, kind: input, shape index: {}]   ;;  %s193_s0 = inlined_call_operand.vmem [shape: bf16[16,32], index: 0, kind: input, shape index: {}]   ;;  %s194_s2 = inlined_call_operand.vmem [shape: f32[1,64], index: 2, kind: input, shape index: {}]   ;;  %s195_s3 = inlined_call_operand.vmem [shape: bf16[16,64], index: 3, kind: output, shape index: {}]  }
   0x1   :  { %135 = vmatprep.subr.bf16.mxu0 %v152_v0  ;;  %v145_v1 = vld [vmem:[%s192_s1 + $0x8] sm:$0xff]   ;;  %139 = vmatprep.mubr.msk.bf16.mxu0 %vm153_vm0, %v152_v0  ;;  %v146_v2 = vld [vmem:[%s192_s1] sm:$0xff]  }
   0x2   :  { %136 = vmatpush3.bf16.msra.mxu0 %v145_v1  ;;  %v147_v3 = vld [vmem:[%s193_s0] sm:$0xff]  }
   0x3   :  { %137 = vmatprep.subr.bf16.mxu0 %v152_v0  ;;  %v123_v4 = vld [vmem:[%s194_s2] ss:$0 sm:$0xff] }
   0x6   :  { %138 = vmatpush3.bf16.msra.mxu0 %v146_v2 }
   0x9   :  { %140 = vmatmul.mubr.msk.bf16.vlgmr.msra.gmra.mxu0 %vm45_vm1, %v147_v3 }
  0xc9   :  { %v83_v5 = vpop.f32.mrf.mxu0 }
  0xca   :  { %v84_v6 = vadd.f32 %v123_v4, %v83_v5 }
  0xcb   :  { %v141_v7 = vpop.f32.mrf.mxu0 }
  0xcc   :  { %v92_v8 = vmul.f32 0.044715, %v84_v6  ;;  %v90_v22 = vmul.f32 0.5, %v84_v6 }
  0xcd   :  { %v86_v9 = vpop.f32.mrf.mxu0 }
  0xce   :  { %v94_v10 = vmul.f32 %v92_v8, %v84_v6  ;;  %v87_v11 = vadd.f32 %v123_v4, %v86_v9 }
  0xcf   :  { %v142_v12 = vpop.f32.mrf.mxu0 }
  0xd0   :  { %v96_v13 = vmul.f32 %v94_v10, %v84_v6  ;;  %v93_v14 = vmul.f32 0.044715, %v87_v11  ;;  %v91_v27 = vmul.f32 0.5, %v87_v11 }
  0xd2   :  { %v98_v15 = vadd.f32 %v96_v13, %v84_v6  ;;  %v95_v16 = vmul.f32 %v93_v14, %v87_v11 }
  0xd4   :  { %v100_v17 = vmul.f32 0.7978846, %v98_v15  ;;  %v97_v18 = vmul.f32 %v95_v16, %v87_v11 }
  0xd6   :  { %148 = vtanh.f32 %v100_v17  ;;  %v99_v19 = vadd.f32 %v97_v18, %v87_v11 }
  0xd8   :  { %v101_v20 = vmul.f32 0.7978846, %v99_v19 }
  0xda   :  { %150 = vtanh.f32 %v101_v20 }
  0xe3   :  { %v149_v21 = vpop.eup %148 }
  0xe4   :  { %v104_v23 = vadd.f32 1.0, %v149_v21 }
  0xe6   :  { %v106_v24 = vmul.f32 %v104_v23, %v90_v22 }
  0xe7   :  { %v151_v25 = vpop.eup %150 }
  0xe8   :  { %v130_v26 = vpack.c.bf16 %v106_v24, %v106_v24  ;;  %v105_v28 = vadd.f32 1.0, %v151_v25 }
  0xea   :  { %117 = vst.msk [vmem:[%s195_s3] sm:$0xf] %vm116_vm2, %v130_v26  ;;  %v107_v29 = vmul.f32 %v105_v28, %v91_v27 }
  0xec   :  { %v131_v30 = vpack.c.bf16 %v107_v29, %v107_v29 }
  0xee   :  { %118 = vst.msk [vmem:[%s195_s3 + $0x4] sm:$0xf] %vm116_vm2, %v131_v30 }

// kernel: bleurt_forward.23
= control target key start
LH: loop header
LB: loop body
LE: loop exit
PB: predicated region body
PF: predicated region fallthrough
CT: control target
= control target key end

     0   :  { %v141_v0 = vmov 0.0   ;;  %vm142_vm0 = vmmov 0   ;;  %vm47_vm1 = vcmask 261120   ;;  %vm100_vm2 = vcmask 254976   ;;  %s194_s1 = inlined_call_operand.vmem [shape: bf16[32,32], index: 1, kind: input, shape index: {}]   ;;  %s195_s0 = inlined_call_operand.vmem [shape: bf16[2,32], index: 0, kind: input, shape index: {}]   ;;  %s196_s4 = inlined_call_operand.<no memory space> [shape: f32[1,1], index: 4, kind: input, shape index: {}]   ;;  %s197_s2 = inlined_call_operand.vmem [shape: f32[1,32], index: 2, kind: input, shape index: {}]   ;;  %s198_s3 = inlined_call_operand.vmem [shape: f32[1,32], index: 3, kind: input, shape index: {}]   ;;  %s199_s5 = inlined_call_operand.vmem [shape: f32[2,1], index: 5, kind: output, shape index: {}]  }
   0x1   :  { %127 = vmatprep.subr.bf16.mxu0 %v141_v0  ;;  %v137_v1 = vld [vmem:[%s194_s1 + $0x8] sm:$0xff]   ;;  %131 = vmatprep.mubr.msk.bf16.mxu0 %vm142_vm0, %v141_v0  ;;  %v138_v2 = vld [vmem:[%s194_s1] sm:$0xff]   ;;  %v10_v4 = vstv %s196_s4  ;;  %vm112_vm3 = vcmask 1024  }
   0x2   :  { %128 = vmatpush3.bf16.msra.mxu0 %v137_v1  ;;  %v23_v3 = vld [vmem:[%s195_s0] sm:$0x1]  ;;  %11 = vst [vmem:[#allocation2] sm:$0x1] %v10_v4 }
   0x3   :  { %129 = vmatprep.subr.bf16.mxu0 %v141_v0  ;;  %v118_v5 = vld [vmem:[%s197_s2] ss:$0 sm:$0xff] }
   0x4   :  { %v122_v11 = vld [vmem:[%s198_s3] ss:$0 sm:$0xff] }
   0x6   :  { %130 = vmatpush3.bf16.msra.mxu0 %v138_v2 }
   0x9   :  { %132 = vmatmul.mubr.msk.bf16.vlgmr.msra.gmra.mxu0 %vm47_vm1, %v23_v3  ;;  %v123_v15 = vld [vmem:[#allocation2] ss:$0 sm:$0xff] }
  0xc9   :  { %v85_v6 = vpop.f32.mrf.mxu0 }
  0xca   :  { %v86_v7 = vadd.f32 %v118_v5, %v85_v6 }
  0xcb   :  { %v133_v8 = vpop.f32.mrf.mxu0 }
  0xcc   :  { %139 = vtanh.f32 %v86_v7 }
  0xcd   :  { %v88_v9 = vpop.f32.mrf.mxu0 }
  0xcf   :  { %v134_v10 = vpop.f32.mrf.mxu0 }
  0xd9   :  { %v140_v12 = vpop.eup %139 }
  0xda   :  { %v99_v13 = vmul.f32 %v140_v12, %v122_v11 }
  0xdc   :  { %v101_v14 = vsel %vm100_vm2, %v99_v13, 0.0 }
  0xdd   :  { %102 = vadd.xlane.f32.xlu0 %v101_v14 }
 0x166   :  { %v103_v16 = vpop.xlane.xlu0 %102 }
 0x167   :  { %v111_v17 = vadd.f32 %v123_v15, %v103_v16 }
 0x169   :  { %113 = vst.msk [vmem:[%s199_s5] sm:$0x3] %vm112_vm3, %v111_v17 }

// kernel: bleurt_forward.17
= control target key start
LH: loop header
LB: loop body
LE: loop exit
PB: predicated region body
PF: predicated region fallthrough
CT: control target
= control target key end

     0   :  { %v227_v0 = vmov 0.0   ;;  %vm228_vm0 = vmmov 0   ;;  %vm70_vm1 = vcmask 523264   ;;  %vm121_vm2 = vcmask 261120   ;;  %s301_s1 = inlined_call_operand.vmem [shape: bf16[64,32], index: 1, kind: input, shape index: {}]   ;;  %s302_s0 = inlined_call_operand.vmem [shape: bf16[16,64], index: 0, kind: input, shape index: {}]   ;;  %s303_s3 = inlined_call_operand.vmem [shape: bf16[16,32], index: 3, kind: input, shape index: {}]   ;;  %s304_s2 = inlined_call_operand.vmem [shape: f32[1,32], index: 2, kind: input, shape index: {}]   ;;  %s305_s4 = inlined_call_operand.vmem [shape: f32[1,32], index: 4, kind: input, shape index: {}]   ;;  %s306_s5 = inlined_call_operand.vmem [shape: f32[1,32], index: 5, kind: input, shape index: {}]   ;;  %s307_s6 = inlined_call_operand.vmem [shape: bf16[16,32], index: 6, kind: output, shape index: {}]  }
   0x1   :  { %204 = vmatprep.subr.bf16.mxu0 %v227_v0  ;;  %v218_v1 = vld [vmem:[%s301_s1 + $0x18] sm:$0xff]   ;;  %212 = vmatprep.mubr.msk.bf16.mxu0 %vm228_vm0, %v227_v0  ;;  %v219_v2 = vld [vmem:[%s301_s1 + $0x10] sm:$0xff]   ;;  %v220_v3 = vld [vmem:[%s301_s1 + $0x8] sm:$0xff]   ;;  %vm175_vm3 = vcmask 257024  }
   0x2   :  { %205 = vmatpush3.bf16.msra.mxu0 %v218_v1  ;;  %v221_v4 = vld [vmem:[%s301_s1] sm:$0xff]  }
   0x3   :  { %206 = vmatprep.subr.bf16.mxu0 %v227_v0  ;;  %v222_v5 = vld [vmem:[%s302_s0] sm:$0xff]  }
   0x4   :  { %v196_v6 = vld [vmem:[%s303_s3] sm:$0xff]  }
   0x5   :  { %v182_v7 = vld [vmem:[%s304_s2] ss:$0 sm:$0xff]  ;;  %v197_v8 = vunpack.c.l.bf16 %v196_v6  ;;  %v198_v13 = vunpack.c.h.bf16 %v196_v6 }
   0x6   :  { %207 = vmatpush3.bf16.msra.mxu0 %v219_v2  ;;  %v189_v37 = vld [vmem:[%s305_s4] ss:$0 sm:$0xff] }
   0x7   :  { %208 = vmatprep.subr.bf16.mxu0 %v227_v0  ;;  %v190_v39 = vld [vmem:[%s306_s5] ss:$0 sm:$0xff] }
   0xa   :  { %209 = vmatpush3.bf16.msra.mxu0 %v220_v3 }
   0xb   :  { %210 = vmatprep.subr.bf16.mxu0 %v227_v0 }
   0xe   :  { %211 = vmatpush3.bf16.msra.mxu0 %v221_v4 }
  0x11   :  { %213 = vmatmul.mubr.msk.bf16.vlgmr.msra.gmra.mxu0 %vm70_vm1, %v222_v5 }
  0xd1   :  { %v108_v9 = vpop.f32.mrf.mxu0 }
  0xd2   :  { %v109_v10 = vadd.f32 %v182_v7, %v108_v9 }
  0xd3   :  { %v214_v11 = vpop.f32.mrf.mxu0 }
  0xd4   :  { %v119_v12 = vadd.f32 %v197_v8, %v109_v10 }
  0xd5   :  { %v111_v14 = vpop.f32.mrf.mxu0 }
  0xd6   :  { %v112_v15 = vadd.f32 %v182_v7, %v111_v14  ;;  %v122_v16 = vsel %vm121_vm2, %v119_v12, 0.0 }
  0xd7   :  { %123 = vadd.xlane.f32.xlu0 %v122_v16  ;;  %v215_v17 = vpop.f32.mrf.mxu0 }
  0xd8   :  { %v120_v18 = vadd.f32 %v198_v13, %v112_v15 }
  0xda   :  { %v125_v19 = vsel %vm121_vm2, %v120_v18, 0.0 }
  0xdb   :  { %126 = vadd.xlane.f32.xlu0 %v125_v19 }
 0x160   :  { %v124_v20 = vpop.xlane.xlu0 %123 }
 0x161   :  { %v129_v21 = vmul.f32 0.03125, %v124_v20 }
 0x163   :  { %v131_v22 = vsub.f32 %v119_v12, %v129_v21 }
 0x164   :  { %v127_v23 = vpop.xlane.xlu0 %126 }
 0x165   :  { %v130_v24 = vmul.f32 0.03125, %v127_v23  ;;  %v133_v25 = vmul.f32 %v131_v22, %v131_v22 }
 0x167   :  { %v132_v26 = vsub.f32 %v120_v18, %v130_v24  ;;  %v135_v27 = vsel %vm121_vm2, %v133_v25, 0.0 }
 0x168   :  { %136 = vadd.xlane.f32.xlu1 %v135_v27 }
 0x169   :  { %v134_v28 = vmul.f32 %v132_v26, %v132_v26 }
 0x16b   :  { %v138_v29 = vsel %vm121_vm2, %v134_v28, 0.0 }
 0x16c   :  { %139 = vadd.xlane.f32.xlu1 %v138_v29 }
 0x1f1   :  { %v137_v30 = vpop.xlane.xlu1 %136 }
 0x1f2   :  { %v141_v31 = vmul.f32 0.03125, %v137_v30 }
 0x1f4   :  { %v143_v32 = vadd.f32 1e-12, %v141_v31 }
 0x1f5   :  { %v140_v33 = vpop.xlane.xlu1 %139 }
 0x1f6   :  { %223 = vrsqrt.f32 %v143_v32  ;;  %v142_v34 = vmul.f32 0.03125, %v140_v33 }
 0x1f8   :  { %v144_v35 = vadd.f32 1e-12, %v142_v34 }
 0x1fa   :  { %225 = vrsqrt.f32 %v144_v35 }
 0x203   :  { %v224_v36 = vpop.eup %223 }
 0x204   :  { %v147_v38 = vmul.f32 %v224_v36, %v131_v22 }
 0x206   :  { %v156_v40 = vmul.f32 %v189_v37, %v147_v38 }
 0x207   :  { %v226_v41 = vpop.eup %225 }
 0x208   :  { %v165_v42 = vadd.f32 %v190_v39, %v156_v40  ;;  %v148_v43 = vmul.f32 %v226_v41, %v132_v26 }
 0x20a   :  { %v193_v44 = vpack.c.bf16 %v165_v42, %v165_v42  ;;  %v157_v45 = vmul.f32 %v189_v37, %v148_v43 }
 0x20c   :  { %176 = vst.msk [vmem:[%s307_s6] sm:$0xf] %vm175_vm3, %v193_v44  ;;  %v166_v46 = vadd.f32 %v190_v39, %v157_v45 }
 0x20e   :  { %v194_v47 = vpack.c.bf16 %v166_v46, %v166_v46 }
 0x210   :  { %177 = vst.msk [vmem:[%s307_s6 + $0x4] sm:$0xf] %vm175_vm3, %v194_v47 }

</bundles_post_ra>
